<compile_context>
chip_gen: v6e
topology: v6e:2x2x1
jax: 0.10.0
libtpu: 0.0.40
codegen_flags: <defaults>
</compile_context>

<pallas_src>
import functools

import numpy as np
import jax
import jax.numpy as jnp
from jax import lax
from jax.experimental import pallas as pl
from jax.experimental.pallas import tpu as pltpu

# ---------------- model / problem constants (small synthetic sizes) -----------
N_TYPE = 3
MAX_NODE = 8
T_STEPS = 2
F_FEAT = 4                    # per-timestep features (last V column = node type)
IN_DIM = T_STEPS * F_FEAT     # 8
HID_DIM = 16
C_GRAPH = IN_DIM // 2         # 4 conv channels
N_NODES = 6
M2 = MAX_NODE // 2            # 4
LRELU_SLOPE = 0.01            # nn.LeakyReLU default

_VMEM = pl.BlockSpec(memory_space=pltpu.MemorySpace.VMEM)
_SMEM = pl.BlockSpec(memory_space=pltpu.MemorySpace.SMEM)


# ---------------- the single fused kernel --------------------------------------
def fused_type_attention_kernel(tcol_ref, trow_ref, feat_ref, g2d_ref,
                                wlinbd_ref, blin_ref, wall_ref, ball_ref,
                                agga_ref, aggb_ref, *rest,
                                n_type, max_node, n_nodes, n_chan, m2, pad):
    """Fused TypeAttention forward.

    tcol_ref  : (N, 1)  f32  node types (1..n_type), column layout
    trow_ref  : (1, N)  f32  node types, row layout
    feat_ref  : (N, in_dim)  concatenated per-timestep features
    g2d_ref   : (C*N, N)     graph, channel blocks stacked along sublanes
    wlinbd_ref: (n_type*m2, n_type*max_node)  kron(I, W_lin)
    blin_ref  : (n_type*m2, 1)
    wall_ref  : (in_dim, n_type*hid)          stacked per-layer Linear weights
    ball_ref  : (1, n_type*hid)
    agga_ref  : (n_type*hid, n_type)          block-diag agg[:hid]
    aggb_ref  : (n_type*hid, n_type)          block-diag agg[hid:]
    rest      : [Mstack_l (2, C*s_out, C*s_in), brows_l (C*s_out, 1)] * pad,
                pl (1,) SMEM, out_ref (C*N, N), att_ref (n_type, n_type),
                wp_ref scratch (C*(N+pad), N+pad)
    """
    conv_refs = rest[:2 * pad]
    pl_ref = rest[2 * pad]
    out_ref = rest[2 * pad + 1]
    att_ref = rest[2 * pad + 2]
    wp_ref = rest[2 * pad + 3]

    N = n_nodes
    C = n_chan
    S0 = N + pad
    f32 = jnp.float32

    feat = feat_ref[...]                                        # (N, in_dim)
    g2d = g2d_ref[...]                                          # (C*N, N)

    # ---- per-type gather + ZeroPad2d as a selection matmul (order preserving)
    trow = trow_ref[...].astype(jnp.int32)                      # (1, N)
    tid_sub = lax.broadcasted_iota(jnp.int32, (n_type, N), 0) + 1
    onehot_t = jnp.where(trow == tid_sub, 1.0, 0.0)             # (n_type, N)
    ri = lax.broadcasted_iota(jnp.int32, (N, N), 0)
    ci = lax.broadcasted_iota(jnp.int32, (N, N), 1)
    upper = jnp.where(ri <= ci, 1.0, 0.0)                       # cumsum via matmul
    pos = jnp.dot(onehot_t, upper,
                  preferred_element_type=f32).astype(jnp.int32) - 1
    rowi = lax.broadcasted_iota(jnp.int32, (max_node, N), 0)
    sel_blocks = []
    for t in range(n_type):
        hit = (pos[t:t + 1, :] == rowi) & (onehot_t[t:t + 1, :] > 0.5)
        sel_blocks.append(jnp.where(hit, 1.0, 0.0))             # (max_node, N)
    sel_all = jnp.concatenate(sel_blocks, axis=0)               # (n_type*max_node, N)

    # ---- TypeAttention.linear on all types at once (block-diag weight) ------
    v_pad = jnp.dot(sel_all, feat, preferred_element_type=f32)  # (n_type*max_node, in_dim)
    v_flat = jnp.dot(wlinbd_ref[...], v_pad,
                     preferred_element_type=f32) + blin_ref[...]  # (n_type*m2, in_dim)

    # ---- all TypeAttentionLayers, batched ------------------------------------
    x_all = jnp.dot(v_flat, wall_ref[...],
                    preferred_element_type=f32) + ball_ref[...]   # (n_type*m2, n_type*hid)
    s_a = jnp.dot(x_all, agga_ref[...], preferred_element_type=f32)  # (n_type*m2, n_type)
    s_b = jnp.dot(x_all, aggb_ref[...], preferred_element_type=f32)  # (n_type*m2, n_type)

    # self-contribution: b_self[o, idx] = s_b[idx*m2 + o, idx]
    lane_idx = lax.broadcasted_iota(jnp.int32, (m2, n_type), 1)
    b_self = jnp.zeros((m2, n_type), f32)
    for i in range(n_type):
        b_self = b_self + jnp.where(lane_idx == i,
                                    s_b[i * m2:(i + 1) * m2, :], 0.0)

    rows = []
    for t in range(n_type):
        sc = s_a[t * m2:(t + 1) * m2, :] + b_self               # (m2, n_type)
        sc = jnp.where(sc >= 0.0, sc, LRELU_SLOPE * sc)         # LeakyReLU
        rows.append(jnp.max(sc, axis=0, keepdims=True))         # MaxPool2d((m2,1))
    scores = jnp.concatenate(rows, axis=0)                      # (n_type, n_type) [t, idx]
    scores = scores - jnp.max(scores, axis=0, keepdims=True)    # softmax over t (dim=0)
    e = jnp.exp(scores)
    s_mat = e / jnp.sum(e, axis=0, keepdims=True)               # s_mat[t, idx] = att[idx][t]

    # att_all[idx, t] = s_mat[t, idx]  (transpose via identity dot, single store)
    eye_r = lax.broadcasted_iota(jnp.int32, (n_type, n_type), 0)
    eye_c = lax.broadcasted_iota(jnp.int32, (n_type, n_type), 1)
    eye = jnp.where(eye_r == eye_c, 1.0, 0.0)
    att_all = lax.dot_general(eye, s_mat, (((1,), (1,)), ((), ())),
                              preferred_element_type=f32)
    att_ref[...] = att_all

    # ---- att_mx gather + elementwise graph weighting -------------------------
    tcol = tcol_ref[...].astype(jnp.int32)                      # (N, 1)
    tid_lane = lax.broadcasted_iota(jnp.int32, (N, n_type), 1) + 1
    onehot = jnp.where(tcol == tid_lane, 1.0, 0.0)              # (N, n_type)
    g_att = lax.dot_general(onehot, s_mat, (((1,), (1,)), ((), ())),
                            preferred_element_type=f32)         # = onehot @ att_all
    att_mx = lax.dot_general(g_att, onehot, (((1,), (1,)), ((), ())),
                             preferred_element_type=f32)        # (N, N)
    valid = jnp.sum(onehot, axis=1, keepdims=True)              # (N, 1)
    vmask = lax.dot_general(valid, valid, (((1,), (1,)), ((), ())),
                            preferred_element_type=f32)
    att_mx = att_mx + (1.0 - vmask)      # untyped pairs keep torch.ones default

    # ---- zero-padded weighted graph into (C*S0, S0) scratch -------------------
    wp_ref[...] = jnp.zeros((C * S0, S0), f32)
    for c in range(C):
        wp_ref[c * S0:c * S0 + N, 0:N] = g2d[c * N:(c + 1) * N, :] * att_mx

    # ---- conv chain: `pad` x (2x2 valid conv) as 2 kron'd 2-D matmuls / layer -
    cur = wp_ref[...]                                           # (C*S0, S0)
    s_in = S0
    for l in range(pad):
        s_out = s_in - 1
        m_ref = conv_refs[2 * l]                                # (2, C*s_out, C*s_in)
        b_ref = conv_refs[2 * l + 1]                            # (C*s_out, 1)
        nxt = jnp.dot(m_ref[0], cur[:, 0:s_out], preferred_element_type=f32)
        nxt = nxt + jnp.dot(m_ref[1], cur[:, 1:1 + s_out],
                            preferred_element_type=f32)
        cur = nxt + b_ref[...]
        s_in = s_out

    # ---- residual + relu (univ == 2, sparse), one dense store -----------------
    p = pl_ref[0]
    out_ref[...] = jnp.maximum(p * cur + g2d, 0.0)


# ---------------- full forward (param repacking + single pallas_call) ----------
def type_attention_forward(V, graph, params, *, n_type, max_node):
    V0 = V[0]                                                   # squeeze(0)
    T = V0.shape[0]
    feat = jnp.concatenate([V0[t, :, :-1] for t in range(T)], axis=1)  # (N, T*F)
    types = V0[0, :, -1]                                        # (N,), 1..n_type
    N, in_dim = feat.shape
    C = graph.shape[0]
    m2 = params['w_lin'].shape[0]
    hid = params['w_att_t'].shape[-1]
    pad = max_node - C               # torch: max_node - len(graph) (len == channels)
    S0 = N + pad

    # ---- one-time parameter repacking (pure layout, amortizable across calls)
    wlinbd = jnp.kron(jnp.eye(n_type, dtype=jnp.float32), params['w_lin'])
    blin_rows = jnp.tile(params['b_lin'], n_type)[:, None]
    wall = jnp.concatenate([params['w_att_t'][i] for i in range(n_type)], axis=1)
    ball = params['b_att'].reshape(1, n_type * hid)
    agga = jnp.zeros((n_type * hid, n_type), jnp.float32)
    aggb = jnp.zeros((n_type * hid, n_type), jnp.float32)
    for i in range(n_type):
        agga = agga.at[i * hid:(i + 1) * hid, i].set(params['agg'][i, :hid, 0])
        aggb = aggb.at[i * hid:(i + 1) * hid, i].set(params['agg'][i, hid:, 0])

    # conv weights kron'd with the row-shift selection so each conv layer is
    # two 2-D matmuls inside the kernel (one per dx shift; dy folded into kron).
    conv_args = []
    s_in = S0
    for _ in range(pad):
        s_out = s_in - 1
        mats = []
        for dx in range(2):
            m = jnp.zeros((C * s_out, C * s_in), jnp.float32)
            for dy in range(2):
                sel = jnp.eye(s_out, s_in, k=dy, dtype=jnp.float32)
                m = m + jnp.kron(params['w2'][:, :, dy, dx], sel)
            mats.append(m)
        conv_args.append(jnp.stack(mats, axis=0))               # (2, C*s_out, C*s_in)
        conv_args.append(jnp.repeat(params['b2'], s_out)[:, None])
        s_in = s_out

    kernel = functools.partial(
        fused_type_attention_kernel,
        n_type=n_type, max_node=max_node, n_nodes=N, n_chan=C, m2=m2, pad=pad)

    out2d, att_all = pl.pallas_call(
        kernel,
        out_shape=(jax.ShapeDtypeStruct((C * N, N), jnp.float32),
                   jax.ShapeDtypeStruct((n_type, n_type), jnp.float32)),
        in_specs=[_VMEM] * (10 + 2 * pad) + [_SMEM],
        out_specs=(_VMEM, _VMEM),
        scratch_shapes=[pltpu.VMEM((C * S0, S0), jnp.float32)],
    )(types.reshape(N, 1), types.reshape(1, N), feat, graph.reshape(C * N, N),
      wlinbd, blin_rows, wall, ball, agga, aggb, *conv_args, params['pl'])

    return out2d.reshape(C, N, N), att_all


# ---------------- plain-JAX reference for verification -------------------------
def reference_forward(V, graph, params, *, n_type, max_node):
    V0 = V[0]
    T = V0.shape[0]
    feat = jnp.concatenate([V0[t, :, :-1] for t in range(T)], axis=1)
    types = V0[0, :, -1]
    in_dim = feat.shape[1]
    C, N, _ = graph.shape
    hid = params['w_att_t'].shape[-1]

    v_pad = []
    for t in range(n_type):
        mask = (types == (t + 1)).astype(jnp.float32)
        pos = jnp.cumsum(mask) - 1.0
        tgt = jnp.where(mask > 0, pos, max_node).astype(jnp.int32)
        buf = jnp.zeros((max_node + 1, in_dim), jnp.float32)
        buf = buf.at[tgt].set(feat * mask[:, None])
        v_pad.append(buf[:max_node])
    v_pad = jnp.stack(v_pad, axis=0)

    v_lin = jnp.einsum('om,tmd->tod', params['w_lin'], v_pad) \
        + params['b_lin'][None, :, None]

    rows = []
    for idx in range(n_type):
        x = jnp.einsum('tod,dh->toh', v_lin, params['w_att_t'][idx]) \
            + params['b_att'][idx][None, None, :]
        agg_a = params['agg'][idx, :hid, 0]
        agg_b = params['agg'][idx, hid:, 0]
        score = jnp.einsum('toh,h->to', x, agg_a) \
            + jnp.einsum('oh,h->o', x[idx], agg_b)[None, :]
        score = jnp.where(score >= 0, score, LRELU_SLOPE * score)
        rows.append(jax.nn.softmax(jnp.max(score, axis=1)))
    att_all = jnp.stack(rows, axis=0)

    onehot = (types[:, None] ==
              jnp.arange(1, n_type + 1, dtype=types.dtype)[None, :]).astype(jnp.float32)
    att_mx = onehot @ att_all @ onehot.T
    valid = onehot.sum(axis=1, keepdims=True)
    att_mx = att_mx + (1.0 - valid @ valid.T)

    wei = graph * att_mx[None]
    pad = max_node - C
    cur = jnp.pad(wei, ((0, 0), (0, pad), (0, pad)))
    for _ in range(pad):
        s_out = cur.shape[-1] - 1
        new = jnp.zeros((C, s_out, s_out)) + params['b2'][:, None, None]
        for dy in range(2):
            for dx in range(2):
                new = new + jnp.einsum('oi,ihw->ohw', params['w2'][:, :, dy, dx],
                                       cur[:, dy:dy + s_out, dx:dx + s_out])
        cur = new
    out = jnp.maximum(params['pl'][0] * cur + graph, 0.0)
    return out, att_all


# ---------------- main ---------------------------------------------------------
if __name__ == "__main__":
    key = jax.random.PRNGKey(0)
    keys = jax.random.split(key, 10)

    # deterministic synthetic parameters (shapes per the module's __init__)
    params = {
        'w_lin': jax.random.uniform(keys[0], (M2, MAX_NODE), jnp.float32, -0.3, 0.3),
        'b_lin': jax.random.uniform(keys[1], (M2,), jnp.float32, -0.3, 0.3),
        # per-layer Linear(in_dim, hid) weight, pre-transposed to (in_dim, hid)
        'w_att_t': jax.random.uniform(keys[2], (N_TYPE, IN_DIM, HID_DIM),
                                      jnp.float32, -0.3, 0.3),
        'b_att': jax.random.uniform(keys[3], (N_TYPE, HID_DIM), jnp.float32, -0.3, 0.3),
        'agg': jax.random.uniform(keys[4], (N_TYPE, 2 * HID_DIM, 1),
                                  jnp.float32, -1.0, 1.0),       # uniform_(-1, 1)
        'w2': jax.random.uniform(keys[5], (C_GRAPH, C_GRAPH, 2, 2),
                                 jnp.float32, -0.25, 0.25),      # graph_cnn2
        'b2': jax.random.uniform(keys[6], (C_GRAPH,), jnp.float32, -0.1, 0.1),
        'pl': jax.random.uniform(keys[7], (1,), jnp.float32, 0.1, 1.0),
    }

    # inputs: V (1, T, N, F+1) with last column of V[0] holding node types 1..n_type
    node_types = jnp.array([1., 1., 2., 2., 3., 3.], jnp.float32)
    V = jax.random.normal(keys[8], (1, T_STEPS, N_NODES, F_FEAT + 1), jnp.float32)
    V = V.at[0, :, :, -1].set(node_types[None, :])
    graph = jax.random.normal(keys[9], (C_GRAPH, N_NODES, N_NODES), jnp.float32)

    out, att_all = type_attention_forward(V, graph, params,
                                          n_type=N_TYPE, max_node=MAX_NODE)
    out = jax.block_until_ready(out)

    ref_out, ref_att = reference_forward(V, graph, params,
                                         n_type=N_TYPE, max_node=MAX_NODE)
    np.testing.assert_allclose(np.asarray(att_all), np.asarray(ref_att),
                               rtol=2e-3, atol=2e-3)
    np.testing.assert_allclose(np.asarray(out), np.asarray(ref_out),
                               rtol=2e-3, atol=2e-3)
    print("KERNEL_OK")
</pallas_src>

<mosaic_0001>
module attributes {stable_mosaic.version = 11 : i64} {
  func.func @fused_type_attention_kernel(%arg0: memref<6x1xf32, #tpu.memory_space<vmem>>, %arg1: memref<1x6xf32, #tpu.memory_space<vmem>>, %arg2: memref<6x8xf32, #tpu.memory_space<vmem>>, %arg3: memref<24x6xf32, #tpu.memory_space<vmem>>, %arg4: memref<12x24xf32, #tpu.memory_space<vmem>>, %arg5: memref<12x1xf32, #tpu.memory_space<vmem>>, %arg6: memref<8x48xf32, #tpu.memory_space<vmem>>, %arg7: memref<1x48xf32, #tpu.memory_space<vmem>>, %arg8: memref<48x3xf32, #tpu.memory_space<vmem>>, %arg9: memref<48x3xf32, #tpu.memory_space<vmem>>, %arg10: memref<2x36x40xf32, #tpu.memory_space<vmem>>, %arg11: memref<36x1xf32, #tpu.memory_space<vmem>>, %arg12: memref<2x32x36xf32, #tpu.memory_space<vmem>>, %arg13: memref<32x1xf32, #tpu.memory_space<vmem>>, %arg14: memref<2x28x32xf32, #tpu.memory_space<vmem>>, %arg15: memref<28x1xf32, #tpu.memory_space<vmem>>, %arg16: memref<2x24x28xf32, #tpu.memory_space<vmem>>, %arg17: memref<24x1xf32, #tpu.memory_space<vmem>>, %arg18: memref<1xf32, #tpu.memory_space<smem>>, %arg19: memref<24x6xf32, #tpu.memory_space<vmem>>, %arg20: memref<3x3xf32, #tpu.memory_space<vmem>>, %arg21: memref<40x10xf32, #tpu.memory_space<vmem>>) attributes {dimension_semantics = [], scalar_prefetch = 0 : i64, scratch_operands = 1 : i64, tpu.core_type = #tpu.core_type<tc>} {
    %c0 = arith.constant 0 : index
    %c0_0 = arith.constant 0 : index
    %0 = vector.load %arg2[%c0, %c0_0] : memref<6x8xf32, #tpu.memory_space<vmem>>, vector<6x8xf32>
    %c0_1 = arith.constant 0 : index
    %c0_2 = arith.constant 0 : index
    %1 = vector.load %arg3[%c0_1, %c0_2] : memref<24x6xf32, #tpu.memory_space<vmem>>, vector<24x6xf32>
    %c0_3 = arith.constant 0 : index
    %c0_4 = arith.constant 0 : index
    %2 = vector.load %arg1[%c0_3, %c0_4] : memref<1x6xf32, #tpu.memory_space<vmem>>, vector<1x6xf32>
    %3 = arith.fptosi %2 : vector<1x6xf32> to vector<1x6xi32>
    %4 = tpu.iota {dimensions = array<i32: 0>} : vector<3x6xi32>
    %c1_i32 = arith.constant 1 : i32
    %5 = vector.broadcast %c1_i32 : i32 to vector<3x6xi32>
    %6 = arith.addi %4, %5 : vector<3x6xi32>
    %7 = vector.broadcast %3 : vector<1x6xi32> to vector<3x6xi32>
    %8 = arith.cmpi eq, %7, %6 : vector<3x6xi32>
    %cst = arith.constant 1.000000e+00 : f32
    %cst_5 = arith.constant 0.000000e+00 : f32
    %9 = vector.broadcast %cst : f32 to vector<3x6xf32>
    %10 = vector.broadcast %cst_5 : f32 to vector<3x6xf32>
    %11 = arith.select %8, %9, %10 : vector<3x6xi1>, vector<3x6xf32>
    %12 = tpu.iota {dimensions = array<i32: 0>} : vector<6x6xi32>
    %13 = tpu.iota {dimensions = array<i32: 1>} : vector<6x6xi32>
    %14 = arith.cmpi sle, %12, %13 : vector<6x6xi32>
    %cst_6 = arith.constant 1.000000e+00 : f32
    %cst_7 = arith.constant 0.000000e+00 : f32
    %15 = vector.broadcast %cst_6 : f32 to vector<6x6xf32>
    %16 = vector.broadcast %cst_7 : f32 to vector<6x6xf32>
    %17 = arith.select %14, %15, %16 : vector<6x6xi1>, vector<6x6xf32>
    %cst_8 = arith.constant dense<0.000000e+00> : vector<3x6xf32>
    %18 = tpu.matmul %11, %17, %cst_8 {dimension_numbers = #tpu.dot_dimension_numbers<[1], [0], [0], [1], [0, 0, 1, 1], [], []>} : vector<3x6xf32>, vector<6x6xf32>, vector<3x6xf32> -> vector<3x6xf32>
    %19 = arith.fptosi %18 : vector<3x6xf32> to vector<3x6xi32>
    %c1_i32_9 = arith.constant 1 : i32
    %20 = vector.broadcast %c1_i32_9 : i32 to vector<3x6xi32>
    %21 = arith.subi %19, %20 : vector<3x6xi32>
    %22 = tpu.iota {dimensions = array<i32: 0>} : vector<8x6xi32>
    %23 = vector.extract_strided_slice %21 {offsets = [0, 0], sizes = [1, 6], strides = [1, 1]} : vector<3x6xi32> to vector<1x6xi32>
    %24 = vector.broadcast %23 : vector<1x6xi32> to vector<8x6xi32>
    %25 = arith.cmpi eq, %24, %22 : vector<8x6xi32>
    %26 = vector.extract_strided_slice %11 {offsets = [0, 0], sizes = [1, 6], strides = [1, 1]} : vector<3x6xf32> to vector<1x6xf32>
    %cst_10 = arith.constant 5.000000e-01 : f32
    %27 = vector.broadcast %cst_10 : f32 to vector<1x6xf32>
    %28 = arith.cmpf ogt, %26, %27 : vector<1x6xf32>
    %29 = vector.broadcast %28 : vector<1x6xi1> to vector<8x6xi1>
    %30 = arith.andi %25, %29 : vector<8x6xi1>
    %cst_11 = arith.constant 1.000000e+00 : f32
    %cst_12 = arith.constant 0.000000e+00 : f32
    %31 = vector.broadcast %cst_11 : f32 to vector<8x6xf32>
    %32 = vector.broadcast %cst_12 : f32 to vector<8x6xf32>
    %33 = arith.select %30, %31, %32 : vector<8x6xi1>, vector<8x6xf32>
    %34 = vector.extract_strided_slice %21 {offsets = [1, 0], sizes = [1, 6], strides = [1, 1]} : vector<3x6xi32> to vector<1x6xi32>
    %35 = vector.broadcast %34 : vector<1x6xi32> to vector<8x6xi32>
    %36 = arith.cmpi eq, %35, %22 : vector<8x6xi32>
    %37 = vector.extract_strided_slice %11 {offsets = [1, 0], sizes = [1, 6], strides = [1, 1]} : vector<3x6xf32> to vector<1x6xf32>
    %cst_13 = arith.constant 5.000000e-01 : f32
    %38 = vector.broadcast %cst_13 : f32 to vector<1x6xf32>
    %39 = arith.cmpf ogt, %37, %38 : vector<1x6xf32>
    %40 = vector.broadcast %39 : vector<1x6xi1> to vector<8x6xi1>
    %41 = arith.andi %36, %40 : vector<8x6xi1>
    %cst_14 = arith.constant 1.000000e+00 : f32
    %cst_15 = arith.constant 0.000000e+00 : f32
    %42 = vector.broadcast %cst_14 : f32 to vector<8x6xf32>
    %43 = vector.broadcast %cst_15 : f32 to vector<8x6xf32>
    %44 = arith.select %41, %42, %43 : vector<8x6xi1>, vector<8x6xf32>
    %45 = vector.extract_strided_slice %21 {offsets = [2, 0], sizes = [1, 6], strides = [1, 1]} : vector<3x6xi32> to vector<1x6xi32>
    %46 = vector.broadcast %45 : vector<1x6xi32> to vector<8x6xi32>
    %47 = arith.cmpi eq, %46, %22 : vector<8x6xi32>
    %48 = vector.extract_strided_slice %11 {offsets = [2, 0], sizes = [1, 6], strides = [1, 1]} : vector<3x6xf32> to vector<1x6xf32>
    %cst_16 = arith.constant 5.000000e-01 : f32
    %49 = vector.broadcast %cst_16 : f32 to vector<1x6xf32>
    %50 = arith.cmpf ogt, %48, %49 : vector<1x6xf32>
    %51 = vector.broadcast %50 : vector<1x6xi1> to vector<8x6xi1>
    %52 = arith.andi %47, %51 : vector<8x6xi1>
    %cst_17 = arith.constant 1.000000e+00 : f32
    %cst_18 = arith.constant 0.000000e+00 : f32
    %53 = vector.broadcast %cst_17 : f32 to vector<8x6xf32>
    %54 = vector.broadcast %cst_18 : f32 to vector<8x6xf32>
    %55 = arith.select %52, %53, %54 : vector<8x6xi1>, vector<8x6xf32>
    %56 = tpu.concatenate %33, %44, %55 in 0 : vector<8x6xf32>, vector<8x6xf32>, vector<8x6xf32> -> vector<24x6xf32>
    %cst_19 = arith.constant dense<0.000000e+00> : vector<24x8xf32>
    %57 = tpu.matmul %56, %0, %cst_19 {dimension_numbers = #tpu.dot_dimension_numbers<[1], [0], [0], [1], [0, 0, 1, 1], [], []>} : vector<24x6xf32>, vector<6x8xf32>, vector<24x8xf32> -> vector<24x8xf32>
    %c0_20 = arith.constant 0 : index
    %c0_21 = arith.constant 0 : index
    %58 = vector.load %arg4[%c0_20, %c0_21] : memref<12x24xf32, #tpu.memory_space<vmem>>, vector<12x24xf32>
    %cst_22 = arith.constant dense<0.000000e+00> : vector<12x8xf32>
    %59 = tpu.matmul %58, %57, %cst_22 {dimension_numbers = #tpu.dot_dimension_numbers<[1], [0], [0], [1], [0, 0, 1, 1], [], []>} : vector<12x24xf32>, vector<24x8xf32>, vector<12x8xf32> -> vector<12x8xf32>
    %c0_23 = arith.constant 0 : index
    %c0_24 = arith.constant 0 : index
    %60 = vector.load %arg5[%c0_23, %c0_24] : memref<12x1xf32, #tpu.memory_space<vmem>>, vector<12x1xf32>
    %61 = vector.broadcast %60 : vector<12x1xf32> to vector<12x8xf32>
    %62 = arith.addf %59, %61 : vector<12x8xf32>
    %c0_25 = arith.constant 0 : index
    %c0_26 = arith.constant 0 : index
    %63 = vector.load %arg6[%c0_25, %c0_26] : memref<8x48xf32, #tpu.memory_space<vmem>>, vector<8x48xf32>
    %cst_27 = arith.constant dense<0.000000e+00> : vector<12x48xf32>
    %64 = tpu.matmul %62, %63, %cst_27 {dimension_numbers = #tpu.dot_dimension_numbers<[1], [0], [0], [1], [0, 0, 1, 1], [], []>} : vector<12x8xf32>, vector<8x48xf32>, vector<12x48xf32> -> vector<12x48xf32>
    %c0_28 = arith.constant 0 : index
    %c0_29 = arith.constant 0 : index
    %65 = vector.load %arg7[%c0_28, %c0_29] : memref<1x48xf32, #tpu.memory_space<vmem>>, vector<1x48xf32>
    %66 = vector.broadcast %65 : vector<1x48xf32> to vector<12x48xf32>
    %67 = arith.addf %64, %66 : vector<12x48xf32>
    %c0_30 = arith.constant 0 : index
    %c0_31 = arith.constant 0 : index
    %68 = vector.load %arg8[%c0_30, %c0_31] : memref<48x3xf32, #tpu.memory_space<vmem>>, vector<48x3xf32>
    %cst_32 = arith.constant dense<0.000000e+00> : vector<12x3xf32>
    %69 = tpu.matmul %67, %68, %cst_32 {dimension_numbers = #tpu.dot_dimension_numbers<[1], [0], [0], [1], [0, 0, 1, 1], [], []>} : vector<12x48xf32>, vector<48x3xf32>, vector<12x3xf32> -> vector<12x3xf32>
    %c0_33 = arith.constant 0 : index
    %c0_34 = arith.constant 0 : index
    %70 = vector.load %arg9[%c0_33, %c0_34] : memref<48x3xf32, #tpu.memory_space<vmem>>, vector<48x3xf32>
    %cst_35 = arith.constant dense<0.000000e+00> : vector<12x3xf32>
    %71 = tpu.matmul %67, %70, %cst_35 {dimension_numbers = #tpu.dot_dimension_numbers<[1], [0], [0], [1], [0, 0, 1, 1], [], []>} : vector<12x48xf32>, vector<48x3xf32>, vector<12x3xf32> -> vector<12x3xf32>
    %72 = tpu.iota {dimensions = array<i32: 1>} : vector<4x3xi32>
    %cst_36 = arith.constant 0.000000e+00 : f32
    %73 = vector.broadcast %cst_36 : f32 to vector<4x3xf32>
    %c0_i32 = arith.constant 0 : i32
    %74 = vector.broadcast %c0_i32 : i32 to vector<4x3xi32>
    %75 = arith.cmpi eq, %72, %74 : vector<4x3xi32>
    %76 = vector.extract_strided_slice %71 {offsets = [0, 0], sizes = [4, 3], strides = [1, 1]} : vector<12x3xf32> to vector<4x3xf32>
    %cst_37 = arith.constant 0.000000e+00 : f32
    %77 = vector.broadcast %cst_37 : f32 to vector<4x3xf32>
    %78 = arith.select %75, %76, %77 : vector<4x3xi1>, vector<4x3xf32>
    %79 = arith.addf %73, %78 : vector<4x3xf32>
    %c1_i32_38 = arith.constant 1 : i32
    %80 = vector.broadcast %c1_i32_38 : i32 to vector<4x3xi32>
    %81 = arith.cmpi eq, %72, %80 : vector<4x3xi32>
    %82 = vector.extract_strided_slice %71 {offsets = [4, 0], sizes = [4, 3], strides = [1, 1]} : vector<12x3xf32> to vector<4x3xf32>
    %cst_39 = arith.constant 0.000000e+00 : f32
    %83 = vector.broadcast %cst_39 : f32 to vector<4x3xf32>
    %84 = arith.select %81, %82, %83 : vector<4x3xi1>, vector<4x3xf32>
    %85 = arith.addf %79, %84 : vector<4x3xf32>
    %c2_i32 = arith.constant 2 : i32
    %86 = vector.broadcast %c2_i32 : i32 to vector<4x3xi32>
    %87 = arith.cmpi eq, %72, %86 : vector<4x3xi32>
    %88 = vector.extract_strided_slice %71 {offsets = [8, 0], sizes = [4, 3], strides = [1, 1]} : vector<12x3xf32> to vector<4x3xf32>
    %cst_40 = arith.constant 0.000000e+00 : f32
    %89 = vector.broadcast %cst_40 : f32 to vector<4x3xf32>
    %90 = arith.select %87, %88, %89 : vector<4x3xi1>, vector<4x3xf32>
    %91 = arith.addf %85, %90 : vector<4x3xf32>
    %92 = vector.extract_strided_slice %69 {offsets = [0, 0], sizes = [4, 3], strides = [1, 1]} : vector<12x3xf32> to vector<4x3xf32>
    %93 = arith.addf %92, %91 : vector<4x3xf32>
    %cst_41 = arith.constant 0.000000e+00 : f32
    %94 = vector.broadcast %cst_41 : f32 to vector<4x3xf32>
    %95 = arith.cmpf oge, %93, %94 : vector<4x3xf32>
    %cst_42 = arith.constant 0.00999999977 : f32
    %96 = vector.broadcast %cst_42 : f32 to vector<4x3xf32>
    %97 = arith.mulf %96, %93 : vector<4x3xf32>
    %98 = arith.select %95, %93, %97 : vector<4x3xi1>, vector<4x3xf32>
    %cst_43 = arith.constant dense<0xFF800000> : vector<3xf32>
    %99 = vector.multi_reduction <maximumf>, %98, %cst_43 [0] : vector<4x3xf32> to vector<3xf32>
    %100 = vector.shape_cast %99 : vector<3xf32> to vector<1x3xf32>
    %101 = vector.extract_strided_slice %69 {offsets = [4, 0], sizes = [4, 3], strides = [1, 1]} : vector<12x3xf32> to vector<4x3xf32>
    %102 = arith.addf %101, %91 : vector<4x3xf32>
    %cst_44 = arith.constant 0.000000e+00 : f32
    %103 = vector.broadcast %cst_44 : f32 to vector<4x3xf32>
    %104 = arith.cmpf oge, %102, %103 : vector<4x3xf32>
    %cst_45 = arith.constant 0.00999999977 : f32
    %105 = vector.broadcast %cst_45 : f32 to vector<4x3xf32>
    %106 = arith.mulf %105, %102 : vector<4x3xf32>
    %107 = arith.select %104, %102, %106 : vector<4x3xi1>, vector<4x3xf32>
    %cst_46 = arith.constant dense<0xFF800000> : vector<3xf32>
    %108 = vector.multi_reduction <maximumf>, %107, %cst_46 [0] : vector<4x3xf32> to vector<3xf32>
    %109 = vector.shape_cast %108 : vector<3xf32> to vector<1x3xf32>
    %110 = vector.extract_strided_slice %69 {offsets = [8, 0], sizes = [4, 3], strides = [1, 1]} : vector<12x3xf32> to vector<4x3xf32>
    %111 = arith.addf %110, %91 : vector<4x3xf32>
    %cst_47 = arith.constant 0.000000e+00 : f32
    %112 = vector.broadcast %cst_47 : f32 to vector<4x3xf32>
    %113 = arith.cmpf oge, %111, %112 : vector<4x3xf32>
    %cst_48 = arith.constant 0.00999999977 : f32
    %114 = vector.broadcast %cst_48 : f32 to vector<4x3xf32>
    %115 = arith.mulf %114, %111 : vector<4x3xf32>
    %116 = arith.select %113, %111, %115 : vector<4x3xi1>, vector<4x3xf32>
    %cst_49 = arith.constant dense<0xFF800000> : vector<3xf32>
    %117 = vector.multi_reduction <maximumf>, %116, %cst_49 [0] : vector<4x3xf32> to vector<3xf32>
    %118 = vector.shape_cast %117 : vector<3xf32> to vector<1x3xf32>
    %119 = tpu.concatenate %100, %109, %118 in 0 : vector<1x3xf32>, vector<1x3xf32>, vector<1x3xf32> -> vector<3x3xf32>
    %cst_50 = arith.constant dense<0xFF800000> : vector<3xf32>
    %120 = vector.multi_reduction <maximumf>, %119, %cst_50 [0] : vector<3x3xf32> to vector<3xf32>
    %121 = vector.shape_cast %120 : vector<3xf32> to vector<1x3xf32>
    %122 = vector.broadcast %121 : vector<1x3xf32> to vector<3x3xf32>
    %123 = arith.subf %119, %122 : vector<3x3xf32>
    %124 = math.exp %123 : vector<3x3xf32>
    %cst_51 = arith.constant dense<0.000000e+00> : vector<3xf32>
    %125 = vector.multi_reduction <add>, %124, %cst_51 [0] : vector<3x3xf32> to vector<3xf32>
    %126 = vector.shape_cast %125 : vector<3xf32> to vector<1x3xf32>
    %127 = vector.broadcast %126 : vector<1x3xf32> to vector<3x3xf32>
    %128 = arith.divf %124, %127 : vector<3x3xf32>
    %129 = tpu.iota {dimensions = array<i32: 0>} : vector<3x3xi32>
    %130 = tpu.iota {dimensions = array<i32: 1>} : vector<3x3xi32>
    %131 = arith.cmpi eq, %129, %130 : vector<3x3xi32>
    %cst_52 = arith.constant 1.000000e+00 : f32
    %cst_53 = arith.constant 0.000000e+00 : f32
    %132 = vector.broadcast %cst_52 : f32 to vector<3x3xf32>
    %133 = vector.broadcast %cst_53 : f32 to vector<3x3xf32>
    %134 = arith.select %131, %132, %133 : vector<3x3xi1>, vector<3x3xf32>
    %cst_54 = arith.constant dense<0.000000e+00> : vector<3x3xf32>
    %135 = tpu.matmul %134, %128, %cst_54 {dimension_numbers = #tpu.dot_dimension_numbers<[1], [1], [0], [0], [0, 0, 1, 0], [], []>} : vector<3x3xf32>, vector<3x3xf32>, vector<3x3xf32> -> vector<3x3xf32>
    %c0_55 = arith.constant 0 : index
    %c0_56 = arith.constant 0 : index
    %136 = vector.load %arg20[%c0_55, %c0_56] : memref<3x3xf32, #tpu.memory_space<vmem>>, vector<3x3xf32>
    tpu.vector_store %arg20[%c0_55, %c0_56], %135 {strides = array<i32>} : memref<3x3xf32, #tpu.memory_space<vmem>>, vector<3x3xf32>,
    %c0_57 = arith.constant 0 : index
    %c0_58 = arith.constant 0 : index
    %137 = vector.load %arg0[%c0_57, %c0_58] : memref<6x1xf32, #tpu.memory_space<vmem>>, vector<6x1xf32>
    %138 = arith.fptosi %137 : vector<6x1xf32> to vector<6x1xi32>
    %139 = tpu.iota {dimensions = array<i32: 1>} : vector<6x3xi32>
    %c1_i32_59 = arith.constant 1 : i32
    %140 = vector.broadcast %c1_i32_59 : i32 to vector<6x3xi32>
    %141 = arith.addi %139, %140 : vector<6x3xi32>
    %142 = vector.broadcast %138 : vector<6x1xi32> to vector<6x3xi32>
    %143 = arith.cmpi eq, %142, %141 : vector<6x3xi32>
    %cst_60 = arith.constant 1.000000e+00 : f32
    %cst_61 = arith.constant 0.000000e+00 : f32
    %144 = vector.broadcast %cst_60 : f32 to vector<6x3xf32>
    %145 = vector.broadcast %cst_61 : f32 to vector<6x3xf32>
    %146 = arith.select %143, %144, %145 : vector<6x3xi1>, vector<6x3xf32>
    %cst_62 = arith.constant dense<0.000000e+00> : vector<6x3xf32>
    %147 = tpu.matmul %146, %128, %cst_62 {dimension_numbers = #tpu.dot_dimension_numbers<[1], [1], [0], [0], [0, 0, 1, 0], [], []>} : vector<6x3xf32>, vector<3x3xf32>, vector<6x3xf32> -> vector<6x3xf32>
    %cst_63 = arith.constant dense<0.000000e+00> : vector<6x6xf32>
    %148 = tpu.matmul %147, %146, %cst_63 {dimension_numbers = #tpu.dot_dimension_numbers<[1], [1], [0], [0], [0, 0, 1, 0], [], []>} : vector<6x3xf32>, vector<6x3xf32>, vector<6x6xf32> -> vector<6x6xf32>
    %cst_64 = arith.constant dense<0.000000e+00> : vector<6xf32>
    %149 = vector.multi_reduction <add>, %146, %cst_64 [1] : vector<6x3xf32> to vector<6xf32>
    %150 = vector.shape_cast %149 : vector<6xf32> to vector<6x1xf32>
    %cst_65 = arith.constant dense<0.000000e+00> : vector<6x6xf32>
    %151 = tpu.matmul %150, %150, %cst_65 {dimension_numbers = #tpu.dot_dimension_numbers<[1], [1], [0], [0], [0, 0, 1, 0], [], []>} : vector<6x1xf32>, vector<6x1xf32>, vector<6x6xf32> -> vector<6x6xf32>
    %cst_66 = arith.constant 1.000000e+00 : f32
    %152 = vector.broadcast %cst_66 : f32 to vector<6x6xf32>
    %153 = arith.subf %152, %151 : vector<6x6xf32>
    %154 = arith.addf %148, %153 : vector<6x6xf32>
    %cst_67 = arith.constant 0.000000e+00 : f32
    %155 = vector.broadcast %cst_67 : f32 to vector<40x10xf32>
    %c0_68 = arith.constant 0 : index
    %c0_69 = arith.constant 0 : index
    %156 = vector.load %arg21[%c0_68, %c0_69] : memref<40x10xf32, #tpu.memory_space<vmem>>, vector<40x10xf32>
    tpu.vector_store %arg21[%c0_68, %c0_69], %155 {strides = array<i32>} : memref<40x10xf32, #tpu.memory_space<vmem>>, vector<40x10xf32>,
    %157 = vector.extract_strided_slice %1 {offsets = [0, 0], sizes = [6, 6], strides = [1, 1]} : vector<24x6xf32> to vector<6x6xf32>
    %158 = arith.mulf %157, %154 : vector<6x6xf32>
    %c0_70 = arith.constant 0 : index
    %c0_71 = arith.constant 0 : index
    %159 = vector.load %arg21[%c0_70, %c0_71] : memref<40x10xf32, #tpu.memory_space<vmem>>, vector<6x6xf32>
    tpu.vector_store %arg21[%c0_70, %c0_71], %158 {strides = array<i32>} : memref<40x10xf32, #tpu.memory_space<vmem>>, vector<6x6xf32>,
    %160 = vector.extract_strided_slice %1 {offsets = [6, 0], sizes = [6, 6], strides = [1, 1]} : vector<24x6xf32> to vector<6x6xf32>
    %161 = arith.mulf %160, %154 : vector<6x6xf32>
    %c10 = arith.constant 10 : index
    %c0_72 = arith.constant 0 : index
    %162 = vector.load %arg21[%c10, %c0_72] : memref<40x10xf32, #tpu.memory_space<vmem>>, vector<6x6xf32>
    tpu.vector_store %arg21[%c10, %c0_72], %161 {strides = array<i32>} : memref<40x10xf32, #tpu.memory_space<vmem>>, vector<6x6xf32>,
    %163 = vector.extract_strided_slice %1 {offsets = [12, 0], sizes = [6, 6], strides = [1, 1]} : vector<24x6xf32> to vector<6x6xf32>
    %164 = arith.mulf %163, %154 : vector<6x6xf32>
    %c20 = arith.constant 20 : index
    %c0_73 = arith.constant 0 : index
    %165 = vector.load %arg21[%c20, %c0_73] : memref<40x10xf32, #tpu.memory_space<vmem>>, vector<6x6xf32>
    tpu.vector_store %arg21[%c20, %c0_73], %164 {strides = array<i32>} : memref<40x10xf32, #tpu.memory_space<vmem>>, vector<6x6xf32>,
    %166 = vector.extract_strided_slice %1 {offsets = [18, 0], sizes = [6, 6], strides = [1, 1]} : vector<24x6xf32> to vector<6x6xf32>
    %167 = arith.mulf %166, %154 : vector<6x6xf32>
    %c30 = arith.constant 30 : index
    %c0_74 = arith.constant 0 : index
    %168 = vector.load %arg21[%c30, %c0_74] : memref<40x10xf32, #tpu.memory_space<vmem>>, vector<6x6xf32>
    tpu.vector_store %arg21[%c30, %c0_74], %167 {strides = array<i32>} : memref<40x10xf32, #tpu.memory_space<vmem>>, vector<6x6xf32>,
    %c0_75 = arith.constant 0 : index
    %c0_76 = arith.constant 0 : index
    %169 = vector.load %arg21[%c0_75, %c0_76] : memref<40x10xf32, #tpu.memory_space<vmem>>, vector<40x10xf32>
    %c0_77 = arith.constant 0 : index
    %c0_78 = arith.constant 0 : index
    %c0_79 = arith.constant 0 : index
    %170 = vector.load %arg10[%c0_77, %c0_78, %c0_79] : memref<2x36x40xf32, #tpu.memory_space<vmem>>, vector<1x36x40xf32>
    %171 = vector.shape_cast %170 : vector<1x36x40xf32> to vector<36x40xf32>
    %172 = vector.extract_strided_slice %169 {offsets = [0, 0], sizes = [40, 9], strides = [1, 1]} : vector<40x10xf32> to vector<40x9xf32>
    %cst_80 = arith.constant dense<0.000000e+00> : vector<36x9xf32>
    %173 = tpu.matmul %171, %172, %cst_80 {dimension_numbers = #tpu.dot_dimension_numbers<[1], [0], [0], [1], [0, 0, 1, 1], [], []>} : vector<36x40xf32>, vector<40x9xf32>, vector<36x9xf32> -> vector<36x9xf32>
    %c1 = arith.constant 1 : index
    %c0_81 = arith.constant 0 : index
    %c0_82 = arith.constant 0 : index
    %174 = vector.load %arg10[%c1, %c0_81, %c0_82] : memref<2x36x40xf32, #tpu.memory_space<vmem>>, vector<1x36x40xf32>
    %175 = vector.shape_cast %174 : vector<1x36x40xf32> to vector<36x40xf32>
    %176 = vector.extract_strided_slice %169 {offsets = [0, 1], sizes = [40, 9], strides = [1, 1]} : vector<40x10xf32> to vector<40x9xf32>
    %cst_83 = arith.constant dense<0.000000e+00> : vector<36x9xf32>
    %177 = tpu.matmul %175, %176, %cst_83 {dimension_numbers = #tpu.dot_dimension_numbers<[1], [0], [0], [1], [0, 0, 1, 1], [], []>} : vector<36x40xf32>, vector<40x9xf32>, vector<36x9xf32> -> vector<36x9xf32>
    %178 = arith.addf %173, %177 : vector<36x9xf32>
    %c0_84 = arith.constant 0 : index
    %c0_85 = arith.constant 0 : index
    %179 = vector.load %arg11[%c0_84, %c0_85] : memref<36x1xf32, #tpu.memory_space<vmem>>, vector<36x1xf32>
    %180 = vector.broadcast %179 : vector<36x1xf32> to vector<36x9xf32>
    %181 = arith.addf %178, %180 : vector<36x9xf32>
    %c0_86 = arith.constant 0 : index
    %c0_87 = arith.constant 0 : index
    %c0_88 = arith.constant 0 : index
    %182 = vector.load %arg12[%c0_86, %c0_87, %c0_88] : memref<2x32x36xf32, #tpu.memory_space<vmem>>, vector<1x32x36xf32>
    %183 = vector.shape_cast %182 : vector<1x32x36xf32> to vector<32x36xf32>
    %184 = vector.extract_strided_slice %181 {offsets = [0, 0], sizes = [36, 8], strides = [1, 1]} : vector<36x9xf32> to vector<36x8xf32>
    %cst_89 = arith.constant dense<0.000000e+00> : vector<32x8xf32>
    %185 = tpu.matmul %183, %184, %cst_89 {dimension_numbers = #tpu.dot_dimension_numbers<[1], [0], [0], [1], [0, 0, 1, 1], [], []>} : vector<32x36xf32>, vector<36x8xf32>, vector<32x8xf32> -> vector<32x8xf32>
    %c1_90 = arith.constant 1 : index
    %c0_91 = arith.constant 0 : index
    %c0_92 = arith.constant 0 : index
    %186 = vector.load %arg12[%c1_90, %c0_91, %c0_92] : memref<2x32x36xf32, #tpu.memory_space<vmem>>, vector<1x32x36xf32>
    %187 = vector.shape_cast %186 : vector<1x32x36xf32> to vector<32x36xf32>
    %188 = vector.extract_strided_slice %181 {offsets = [0, 1], sizes = [36, 8], strides = [1, 1]} : vector<36x9xf32> to vector<36x8xf32>
    %cst_93 = arith.constant dense<0.000000e+00> : vector<32x8xf32>
    %189 = tpu.matmul %187, %188, %cst_93 {dimension_numbers = #tpu.dot_dimension_numbers<[1], [0], [0], [1], [0, 0, 1, 1], [], []>} : vector<32x36xf32>, vector<36x8xf32>, vector<32x8xf32> -> vector<32x8xf32>
    %190 = arith.addf %185, %189 : vector<32x8xf32>
    %c0_94 = arith.constant 0 : index
    %c0_95 = arith.constant 0 : index
    %191 = vector.load %arg13[%c0_94, %c0_95] : memref<32x1xf32, #tpu.memory_space<vmem>>, vector<32x1xf32>
    %192 = vector.broadcast %191 : vector<32x1xf32> to vector<32x8xf32>
    %193 = arith.addf %190, %192 : vector<32x8xf32>
    %c0_96 = arith.constant 0 : index
    %c0_97 = arith.constant 0 : index
    %c0_98 = arith.constant 0 : index
    %194 = vector.load %arg14[%c0_96, %c0_97, %c0_98] : memref<2x28x32xf32, #tpu.memory_space<vmem>>, vector<1x28x32xf32>
    %195 = vector.shape_cast %194 : vector<1x28x32xf32> to vector<28x32xf32>
    %196 = vector.extract_strided_slice %193 {offsets = [0, 0], sizes = [32, 7], strides = [1, 1]} : vector<32x8xf32> to vector<32x7xf32>
    %cst_99 = arith.constant dense<0.000000e+00> : vector<28x7xf32>
    %197 = tpu.matmul %195, %196, %cst_99 {dimension_numbers = #tpu.dot_dimension_numbers<[1], [0], [0], [1], [0, 0, 1, 1], [], []>} : vector<28x32xf32>, vector<32x7xf32>, vector<28x7xf32> -> vector<28x7xf32>
    %c1_100 = arith.constant 1 : index
    %c0_101 = arith.constant 0 : index
    %c0_102 = arith.constant 0 : index
    %198 = vector.load %arg14[%c1_100, %c0_101, %c0_102] : memref<2x28x32xf32, #tpu.memory_space<vmem>>, vector<1x28x32xf32>
    %199 = vector.shape_cast %198 : vector<1x28x32xf32> to vector<28x32xf32>
    %200 = vector.extract_strided_slice %193 {offsets = [0, 1], sizes = [32, 7], strides = [1, 1]} : vector<32x8xf32> to vector<32x7xf32>
    %cst_103 = arith.constant dense<0.000000e+00> : vector<28x7xf32>
    %201 = tpu.matmul %199, %200, %cst_103 {dimension_numbers = #tpu.dot_dimension_numbers<[1], [0], [0], [1], [0, 0, 1, 1], [], []>} : vector<28x32xf32>, vector<32x7xf32>, vector<28x7xf32> -> vector<28x7xf32>
    %202 = arith.addf %197, %201 : vector<28x7xf32>
    %c0_104 = arith.constant 0 : index
    %c0_105 = arith.constant 0 : index
    %203 = vector.load %arg15[%c0_104, %c0_105] : memref<28x1xf32, #tpu.memory_space<vmem>>, vector<28x1xf32>
    %204 = vector.broadcast %203 : vector<28x1xf32> to vector<28x7xf32>
    %205 = arith.addf %202, %204 : vector<28x7xf32>
    %c0_106 = arith.constant 0 : index
    %c0_107 = arith.constant 0 : index
    %c0_108 = arith.constant 0 : index
    %206 = vector.load %arg16[%c0_106, %c0_107, %c0_108] : memref<2x24x28xf32, #tpu.memory_space<vmem>>, vector<1x24x28xf32>
    %207 = vector.shape_cast %206 : vector<1x24x28xf32> to vector<24x28xf32>
    %208 = vector.extract_strided_slice %205 {offsets = [0, 0], sizes = [28, 6], strides = [1, 1]} : vector<28x7xf32> to vector<28x6xf32>
    %cst_109 = arith.constant dense<0.000000e+00> : vector<24x6xf32>
    %209 = tpu.matmul %207, %208, %cst_109 {dimension_numbers = #tpu.dot_dimension_numbers<[1], [0], [0], [1], [0, 0, 1, 1], [], []>} : vector<24x28xf32>, vector<28x6xf32>, vector<24x6xf32> -> vector<24x6xf32>
    %c1_110 = arith.constant 1 : index
    %c0_111 = arith.constant 0 : index
    %c0_112 = arith.constant 0 : index
    %210 = vector.load %arg16[%c1_110, %c0_111, %c0_112] : memref<2x24x28xf32, #tpu.memory_space<vmem>>, vector<1x24x28xf32>
    %211 = vector.shape_cast %210 : vector<1x24x28xf32> to vector<24x28xf32>
    %212 = vector.extract_strided_slice %205 {offsets = [0, 1], sizes = [28, 6], strides = [1, 1]} : vector<28x7xf32> to vector<28x6xf32>
    %cst_113 = arith.constant dense<0.000000e+00> : vector<24x6xf32>
    %213 = tpu.matmul %211, %212, %cst_113 {dimension_numbers = #tpu.dot_dimension_numbers<[1], [0], [0], [1], [0, 0, 1, 1], [], []>} : vector<24x28xf32>, vector<28x6xf32>, vector<24x6xf32> -> vector<24x6xf32>
    %214 = arith.addf %209, %213 : vector<24x6xf32>
    %c0_114 = arith.constant 0 : index
    %c0_115 = arith.constant 0 : index
    %215 = vector.load %arg17[%c0_114, %c0_115] : memref<24x1xf32, #tpu.memory_space<vmem>>, vector<24x1xf32>
    %216 = vector.broadcast %215 : vector<24x1xf32> to vector<24x6xf32>
    %217 = arith.addf %214, %216 : vector<24x6xf32>
    %c0_116 = arith.constant 0 : index
    %218 = memref.load %arg18[%c0_116] : memref<1xf32, #tpu.memory_space<smem>>
    %219 = vector.broadcast %218 : f32 to vector<24x6xf32>
    %220 = arith.mulf %219, %217 : vector<24x6xf32>
    %221 = arith.addf %220, %1 : vector<24x6xf32>
    %cst_117 = arith.constant 0.000000e+00 : f32
    %222 = vector.broadcast %cst_117 : f32 to vector<24x6xf32>
    %223 = arith.maximumf %221, %222 : vector<24x6xf32>
    %c0_118 = arith.constant 0 : index
    %c0_119 = arith.constant 0 : index
    %224 = vector.load %arg19[%c0_118, %c0_119] : memref<24x6xf32, #tpu.memory_space<vmem>>, vector<24x6xf32>
    tpu.vector_store %arg19[%c0_118, %c0_119], %223 {strides = array<i32>} : memref<24x6xf32, #tpu.memory_space<vmem>>, vector<24x6xf32>,
    return
  }
}

</mosaic_0001>

<bundles_post_ra>
// kernel: tpu_custom_call.1
= control target key start
LH: loop header
LB: loop body
LE: loop exit
PB: predicated region body
PF: predicated region fallthrough
CT: control target
= control target key end

     0   :  { %s3098_s0 = inlined_call_operand.vmem [shape: f32[6,1], index: 0, kind: input, shape index: {}]   ;;  %s3099_s1 = inlined_call_operand.vmem [shape: f32[1,6], index: 1, kind: input, shape index: {}]   ;;  %s3100_s2 = inlined_call_operand.vmem [shape: f32[6,8], index: 2, kind: input, shape index: {}]   ;;  %s3101_s3 = inlined_call_operand.vmem [shape: f32[24,6], index: 3, kind: input, shape index: {}]   ;;  %s3102_s4 = inlined_call_operand.vmem [shape: f32[12,24], index: 4, kind: input, shape index: {}]   ;;  %s3103_s5 = inlined_call_operand.vmem [shape: f32[12,1], index: 5, kind: input, shape index: {}]   ;;  %s3104_s6 = inlined_call_operand.vmem [shape: f32[8,48], index: 6, kind: input, shape index: {}]   ;;  %s3105_s7 = inlined_call_operand.vmem [shape: f32[1,48], index: 7, kind: input, shape index: {}]   ;;  %s3106_s8 = inlined_call_operand.vmem [shape: f32[48,3], index: 8, kind: input, shape index: {}]   ;;  %s3107_s9 = inlined_call_operand.vmem [shape: f32[48,3], index: 9, kind: input, shape index: {}]   ;;  %s3108_s10 = inlined_call_operand.vmem [shape: f32[2,36,40], index: 10, kind: input, shape index: {}]   ;;  %s3109_s11 = inlined_call_operand.vmem [shape: f32[36,1], index: 11, kind: input, shape index: {}]   ;;  %s3110_s12 = inlined_call_operand.vmem [shape: f32[2,32,36], index: 12, kind: input, shape index: {}]   ;;  %s3111_s13 = inlined_call_operand.vmem [shape: f32[32,1], index: 13, kind: input, shape index: {}]   ;;  %s3112_s14 = inlined_call_operand.vmem [shape: f32[2,28,32], index: 14, kind: input, shape index: {}]   ;;  %s3113_s15 = inlined_call_operand.vmem [shape: f32[28,1], index: 15, kind: input, shape index: {}]   ;;  %s3114_s16 = inlined_call_operand.vmem [shape: f32[2,24,28], index: 16, kind: input, shape index: {}]   ;;  %s3115_s17 = inlined_call_operand.vmem [shape: f32[24,1], index: 17, kind: input, shape index: {}]   ;;  %s3116_s18 = inlined_call_operand.<no memory space> [shape: f32[1], index: 18, kind: input, shape index: {}]   ;;  %s3117_s19 = inlined_call_operand.vmem [shape: f32[24,6], index: 19, kind: output, shape index: {0}]   ;;  %s3118_s20 = inlined_call_operand.hbm [shape: f32[3,3], index: 20, kind: output, shape index: {1}]  }
   0x1   :  { %3121 = sst [smem:[#allocation7_spill]] %s3098_s0 }
   0x2   :  { %3122 = sst [smem:[#allocation8_spill]] %s3099_s1 }
   0x3   :  { %3123 = sst [smem:[#allocation9_spill]] %s3100_s2 }
   0x4   :  { %3124 = sst [smem:[#allocation10_spill]] %s3101_s3 }
   0x5   :  { %3125 = sst [smem:[#allocation11_spill]] %s3102_s4 }
   0x6   :  { %v72_v0 = vlaneseq  ;;  %s3126_s23 = sld [smem:[#allocation8_spill]]  ;;  %v2557_v2 = vmov 0.0   ;;  %vm2558_vm0 = vmmov 0  }
   0x7   :  { %2294 = vmatprep.subr.mxu0 %v2557_v2  ;;  %2296 = vmatprep.mubr.msk.f32.mxu0 %vm2558_vm0, %v2557_v2 }
   0xc   :  { %v70_v1 = vld [vmem:[%s3126_s23] sm:$0x1] }
   0xd   :  { %v2518_v3 = vtrunc.f32 %v70_v1 }
   0xe   :  { %27 = vsyncpa [#allocation5], 0  ;;  %v2673_v4 = vshrl.u32 %v72_v0, 7  ;;  %v2675_v5 = vand.u32 127, %v72_v0  ;;  %2299 = vmatprep.subr.mxu1 %v2557_v2  ;;  %2301 = vmatprep.mubr.msk.f32.mxu1 %vm2558_vm0, %v2557_v2  ;;  %vm89_vm1 = vcmask 1045504   ;;  %v2559_v7 = vmov 0  }
   0xf   :  { %v2519_v6 = vcvt.f32.s32 %v2518_v3  ;;  %2529 = vset.pattern.permute.xlu0 %v2559_v7  ;;  %2530 = vset.pattern.permute.xlu1 %v2559_v7  ;;  %vm85_vm3 = vcmask 48128   ;;  %s3127_s25 = sld [smem:[#allocation9_spill]]  ;;  %vm309_vm15 = vcmask 195584   ;;  %v297_v32 = vld [vmem:[%s3103_s5] sm:$0xff]  ;;  %v298_v33 = vld [vmem:[%s3103_s5 + $0x8] sm:$0xf] }
  0x10   :  { %vm83_vm2 = vcmp.le.s32.totalorder %v2673_v4, %v2675_v5  ;;  %v74_v8 = vadd.s32 1, %v2673_v4  ;;  %v77_v9 = vsub.s32 0, %v2673_v4  ;;  %v181_v17 = vsub.s32 1, %v2673_v4  ;;  %s3128_s27 = sld [smem:[#allocation11_spill]]  ;;  %301 = vperm.xlu0 %2529, %v297_v32   ;;  %v391_v41 = vld [vmem:[%s3104_s6] sm:$0xff]  ;;  %v486_v42 = vld [vmem:[%s3106_s8 + $0x28] sm:$0xff] }
  0x11   :  { %v84_v10 = vsel %vm83_vm2, 1.0, %v2557_v2  ;;  %v193_v21 = vsub.s32 2, %v2673_v4  ;;  %v574_v43 = vld [vmem:[%s3107_s9 + $0x28] sm:$0xff]  ;;  %v485_v44 = vld [vmem:[%s3106_s8 + $0x20] sm:$0xff]  ;;  %v484_v45 = vld [vmem:[%s3106_s8 + $0x18] sm:$0xff]  ;;  %s3129_s28 = sld [smem:[#allocation7_spill]] }
  0x12   :  { %2295 = vmatpush3.msk.msra.mxu0 %vm89_vm1, %v84_v10  ;;  %v78_v11 = vrot.slane %v2519_v6, %v77_v9  ;;  %v573_v52 = vld [vmem:[%s3107_s9 + $0x20] sm:$0xff]  ;;  %v572_v53 = vld [vmem:[%s3107_s9 + $0x18] sm:$0xff]  ;;  %v483_v54 = vld [vmem:[%s3106_s8 + $0x10] sm:$0xff]  ;;  %vm487_vm2 = vcmask 392192   ;;  %v806_v6 = vadd.s32 1, %v2675_v5  ;;  %s3130_s0 = sld [smem:[#allocation10_spill]] }
  0x13   :  { %v571_v55 = vld [vmem:[%s3107_s9 + $0x10] sm:$0xff]  ;;  %v482_v56 = vld [vmem:[%s3106_s8 + $0x8] sm:$0xff]  ;;  %v481_v58 = vld [vmem:[%s3106_s8] sm:$0xff]  ;;  %s2560_s23 = smov 127   ;;  %s2561_s3 = smov [#allocation4]  }
  0x14   :  { %vm79_vm4 = vcmp.eq.s32.totalorder %v78_v11, %v74_v8  ;;  %306 = vperm.xlu0 %2529, %v298_v33   ;;  %v570_v57 = vld [vmem:[%s3107_s9 + $0x8] sm:$0xff]  ;;  %v569_v59 = vld [vmem:[%s3107_s9] sm:$0xff]  ;;  %s2102_s26 = sshll.u32 %s2561_s3, 4  ;;  %s2103_s26 = int_to_ptr.vmem [resolvable:$true] %s2102_s26 }
  0x15   :  { %v80_v12 = vsel %vm79_vm4, 1.0, %v2557_v2  ;;  %v66_v14 = vld [vmem:[%s3127_s25] sm:$0x3f]  ;;  %vm885_vm4 = vcmask 21504   ;;  %s2535_s6 = scalar_lea.vmem %s2103_s26, 64  ;;  %p2540_p1 = scmp.lt.s32.totalorder %s2103_s26, %s2103_s26 }
  0x16   :  { %2297 = vmatmul.mubr.msk.f32.vlgmr.msra.gmra.mxu0 %vm85_vm3, %v80_v12  ;;  %vm170_vm5 = vcmp.gt.f32.partialorder %v80_v12, 0.5  ;;  %2300 = vmatpush3.msk.msra.mxu1 %vm89_vm1, %v66_v14  ;;  %v295_v31 = vld [vmem:[%s3128_s27] sm:$0xff]  ;;  %v296_v40 = vld [vmem:[%s3128_s27 + $0x8] sm:$0xf]  ;;  %vm399_vm1 = vcmask 64512   ;;  %p2536_p0 = scmp.ne.s32.totalorder %s2103_s26, %s2535_s6  ;;  %p2541_p2 = scmp.lt.s32.totalorder %s2535_s6, %s2535_s6 }
  0x17   :  { %v171_v13 = vsel %vm170_vm5, 1, %v2559_v7  ;;  %2316 = vmatprep.mubr.msk.f32.mxu0 %vm309_vm15, %v295_v31  ;;  %2324 = vmatprep.subr.mxu1 %v486_v42  ;;  %v804_v60 = vld [vmem:[%s3129_s28] sm:$0x3f] }
  0x18   :  { %v175_v20 = vrot.slane %v171_v13, %v77_v9  ;;  %v187_v23 = vrot.slane %v171_v13, %v181_v17  ;;  %v199_v26 = vrot.slane %v171_v13, %v193_v21  ;;  %v2522_v61 = vtrunc.f32 %v804_v60  ;;  %v2121_v0 = vld [vmem:[%s3105_s7] ss:$0 sm:$0xff]  ;;  %p2542_p3 = por %p2541_p2, %p2540_p1 }
  0x19   :  { %v1315_v11 = vld [vmem:[%s3109_s11] sm:$0xff] }
  0x1a   :  { %vm176_vm6 = vcmp.eq.s32.totalorder %v175_v20, 1  ;;  %vm188_vm9 = vcmp.eq.s32.totalorder %v187_v23, 1  ;;  %vm200_vm13 = vcmp.eq.s32.totalorder %v199_v26, 1  ;;  %v2523_v62 = vcvt.f32.s32 %v2522_v61  ;;  %p2543_p4 = pnand %p2542_p3, %p2536_p0 }
  0x1c   :  { %808 = vperm.xlu1 %2530, %v2523_v62  }
  0x8b   :  { %v302_v46 = vpop.permute.xlu0 %301 }
  0x8f   :  { %v307_v48 = vpop.permute.xlu0 %306 }
  0x97   :  { %v809_v8 = vpop.permute.xlu1 %808 }
  0x98   :  { %vm810_vm5 = vcmp.eq.s32.totalorder %v809_v8, %v806_v6 }
  0xd6   :  { %v159_v15 = vpop.f32.mrf.mxu0 }
  0xd7   :  { %v2520_v16 = vtrunc.f32 %v159_v15 }
  0xd8   :  { %v2298_v18 = vpop.f32.mrf.mxu0 }
  0xd9   :  { %v2521_v19 = vcvt.f32.s32 %v2520_v16 }
  0xdb   :  { %v2114_v22 = vadd.s32 4294967295, %v2521_v19 }
  0xdd   :  { %v168_v24 = vrot.slane %v2114_v22, %v77_v9  ;;  %v182_v25 = vrot.slane %v2114_v22, %v181_v17  ;;  %v194_v27 = vrot.slane %v2114_v22, %v193_v21  ;;  %v2774_v9 = vsel %vm810_vm5, 1.0, %v2557_v2 }
  0xde   :  { %v886_v10 = vsel %vm885_vm4, %v2774_v9, 0.0  ;;  %vm724_vm4 = vcmp.eq.s32.totalorder %v2673_v4, %v2675_v5  ;;  %vm889_vm5 = vcmask 7168  }
  0xdf   :  { %vm169_vm7 = vcmp.eq.s32.totalorder %v168_v24, %v2673_v4  ;;  %vm183_vm8 = vcmp.eq.s32.totalorder %v182_v25, %v2673_v4  ;;  %vm195_vm12 = vcmp.eq.s32.totalorder %v194_v27, %v2673_v4  ;;  %887 = vadd.xlane.f32.xlu1 %v886_v10 }
  0xe0   :  { %vm177_vm10 = vmand %vm169_vm7, %vm176_vm6  ;;  %vm726_vm6 = vcmask 23552   ;;  %vm653_vm7 = vcmp.eq.s32.totalorder %v2675_v5, 1 }
  0xe1   :  { %v178_v28 = vsel %vm177_vm10, 1.0, %v2557_v2  ;;  %vm189_vm11 = vmand %vm183_vm8, %vm188_vm9  ;;  %vm650_vm8 = vcmp.eq.s32.totalorder %v2675_v5, 0  ;;  %vm659_vm9 = vcmp.eq.s32.totalorder %v2675_v5, 2  ;;  %vm666_vm10 = vcmask 19456  }
  0xe2   :  { %2302 = vmatmul.mubr.msk.f32.vlgmr.msra.gmra.mxu1 %vm85_vm3, %v178_v28  ;;  %v190_v29 = vsel %vm189_vm11, 1.0, %v2557_v2  ;;  %vm201_vm14 = vmand %vm195_vm12, %vm200_vm13 }
  0xe3   :  { %2304 = vmatprep.mubr.msk.f32.mxu1 %vm2558_vm0, %v2557_v2  ;;  %v202_v30 = vsel %vm201_vm14, 1.0, %v2557_v2  ;;  %2325 = vmatpush3.msra.mxu1 %v486_v42  ;;  %vm681_vm14 = vcmask 23556  }
  0xe4   :  { %2326 = vmatprep.subr.mxu1 %v485_v44 }
  0xe5   :  { %2327 = vmatpush3.msra.mxu1 %v485_v44 }
  0xe6   :  { %2305 = vmatmul.mubr.msk.f32.gmra.mxu1 %vm85_vm3, %v190_v29  ;;  %2328 = vmatprep.subr.mxu1 %v484_v45 }
  0xe7   :  { %2307 = vmatprep.mubr.msk.f32.mxu1 %vm2558_vm0, %v2557_v2  ;;  %2329 = vmatpush3.msra.mxu1 %v484_v45 }
  0xe8   :  { %2330 = vmatprep.subr.mxu1 %v483_v54 }
  0xe9   :  { %2331 = vmatpush3.msra.mxu1 %v483_v54 }
  0xea   :  { %2308 = vmatmul.mubr.msk.f32.gmra.mxu1 %vm85_vm3, %v202_v30  ;;  %2332 = vmatprep.subr.mxu1 %v482_v56 }
  0xeb   :  { %2333 = vmatpush3.msra.mxu1 %v482_v56 }
  0xec   :  { %2334 = vmatprep.subr.mxu1 %v481_v58 }
  0xed   :  { %2335 = vmatpush3.msra.mxu1 %v481_v58 }
  0xee   :  { %2354 = vmatprep.subr.mxu1 %v2557_v2 }
  0xf0   :  { %1322 = vperm.xlu1 %2530, %v1315_v11  }
 0x1a2   :  { %v281_v34 = vpop.f32.mrf.mxu1 }
 0x1a4   :  { %v2303_v35 = vpop.f32.mrf.mxu1 }
 0x1a6   :  { %v286_v36 = vpop.f32.mrf.mxu1 }
 0x1a8   :  { %v2306_v37 = vpop.f32.mrf.mxu1 }
 0x1aa   :  { %v291_v38 = vpop.f32.mrf.mxu1 }
 0x1ab   :  { %2310 = vmatprep.subr.mxu0 %v291_v38 }
 0x1ac   :  { %v2309_v39 = vpop.f32.mrf.mxu1  ;;  %2311 = vmatpush3.msra.mxu0 %v291_v38 }
 0x1ad   :  { %2312 = vmatprep.subr.mxu0 %v286_v36 }
 0x1ae   :  { %2313 = vmatpush3.msra.mxu0 %v286_v36 }
 0x1af   :  { %2314 = vmatprep.subr.mxu0 %v281_v34 }
 0x1b0   :  { %2315 = vmatpush3.msra.mxu0 %v281_v34 }
 0x1b1   :  { %2317 = vmatmul.mubr.msk.f32.vlgmr.msra.gmra.mxu0 %vm309_vm15, %v296_v40  ;;  %2319 = vmatprep.subr.mxu0 %v391_v41  ;;  %vm700_vm15 = vcmask 1040384  }
 0x1b2   :  { %2320 = vmatpush3.msra.mxu0 %v391_v41 }
 0x1b3   :  { %2339 = vmatprep.subr.mxu0 %v574_v43 }
 0x271   :  { %v2318_v47 = vpop.f32.mrf.mxu0 }
 0x272   :  { %v388_v51 = vadd.f32 %v2318_v47, %v307_v48 }
 0x273   :  { %v382_v49 = vpop.f32.mrf.mxu0 }
 0x274   :  { %v383_v50 = vadd.f32 %v382_v49, %v302_v46 }
 0x276   :  { %2321 = vmatprep.mubr.msk.f32.mxu0 %vm399_vm1, %v383_v50 }
 0x277   :  { %2322 = vmatmul.mubr.msk.f32.vlgmr.msra.gmra.mxu0 %vm399_vm1, %v388_v51  ;;  %vm702_vm1 = vcmask 1041408  }
 0x278   :  { %2340 = vmatpush3.msra.mxu0 %v574_v43 }
 0x279   :  { %2341 = vmatprep.subr.mxu0 %v573_v52 }
 0x27a   :  { %2342 = vmatpush3.msra.mxu0 %v573_v52 }
 0x27b   :  { %2343 = vmatprep.subr.mxu0 %v572_v53 }
 0x27c   :  { %2344 = vmatpush3.msra.mxu0 %v572_v53 }
 0x27d   :  { %2345 = vmatprep.subr.mxu0 %v571_v55 }
 0x27e   :  { %2346 = vmatpush3.msra.mxu0 %v571_v55 }
 0x27f   :  { %2347 = vmatprep.subr.mxu0 %v570_v57 }
 0x280   :  { %2348 = vmatpush3.msra.mxu0 %v570_v57 }
 0x281   :  { %2349 = vmatprep.subr.mxu0 %v569_v59 }
 0x282   :  { %2350 = vmatpush3.msra.mxu0 %v569_v59 }
 0x283   :  { %2369 = vmatprep.subr.mxu0 %v2557_v2 }
 0x337   :  { %v2323_v63 = vpop.f32.mrf.mxu0 }
 0x338   :  { %v478_v7 = vadd.f32 %v2323_v63, %v2121_v0 }
 0x339   :  { %v472_v1 = vpop.f32.mrf.mxu0 }
 0x33a   :  { %v473_v3 = vadd.f32 %v2121_v0, %v472_v1 }
 0x33c   :  { %2336 = vmatprep.mubr.msk.f32.mxu1 %vm487_vm2, %v473_v3  ;;  %2351 = vmatprep.mubr.msk.f32.mxu0 %vm487_vm2, %v473_v3 }
 0x33d   :  { %2337 = vmatmul.mubr.msk.f32.vlgmr.msra.gmra.mxu1 %vm487_vm2, %v478_v7  ;;  %2352 = vmatmul.mubr.msk.f32.vlgmr.msra.gmra.mxu0 %vm487_vm2, %v478_v7  ;;  %vm704_vm2 = vcmask 18432  }
 0x33e   :  { %2356 = vmatprep.mubr.msk.f32.mxu1 %vm2558_vm0, %v2557_v2  ;;  %2371 = vmatprep.mubr.msk.f32.mxu0 %vm2558_vm0, %v2557_v2 }
 0x33f   :  { %2370 = vmatpush3.xpose.msk.msra.mxu0 %vm726_vm6, %v2774_v9 }
 0x340   :  { %2399 = vmatprep.subr.mxu0 %v2557_v2 }
 0x3fd   :  { %v2353_v12 = vpop.f32.mrf.mxu0  ;;  %v2338_v16 = vpop.f32.mrf.mxu1 }
 0x3fe   :  { %v660_v19 = vsel %vm659_vm9, %v2353_v12, 0.0  ;;  %vm1053_vm9 = vcmask 44032  }
 0x3ff   :  { %v641_v13 = vpop.f32.mrf.mxu0  ;;  %v560_v21 = vpop.f32.mrf.mxu1 }
 0x400   :  { %v654_v14 = vsel %vm653_vm7, %v641_v13, 0.0  ;;  %v651_v17 = vsel %vm650_vm8, %v641_v13, 0.0  ;;  %vm1037_vm7 = vcmask 80896   ;;  %vm1051_vm8 = vcmask 48134  }
 0x401   :  { %v656_v15 = vrot.slane %v654_v14, 4  ;;  %v725_v14 = vsel %vm724_vm4, 1.0, %v2557_v2  ;;  %1038 = vst.msk [vmem:[#allocation2] sm:$0xff] %vm1037_vm7, %v2557_v2  ;;  %1039 = vst.msk [vmem:[#allocation2 + $0x8] sm:$0xff] %vm1037_vm7, %v2557_v2 }
 0x402   :  { %1040 = vst.msk [vmem:[#allocation2 + $0x10] sm:$0xff] %vm1037_vm7, %v2557_v2  ;;  %1041 = vst.msk [vmem:[#allocation2 + $0x18] sm:$0xff] %vm1037_vm7, %v2557_v2 }
 0x403   :  { %v658_v18 = vadd.f32 %v656_v15, %v651_v17  ;;  %v888_v15 = vpop.xlane.xlu1 %887  ;;  %1042 = vst.msk [vmem:[#allocation2 + $0x20] sm:$0xff] %vm1037_vm7, %v2557_v2 }
 0x405   :  { %v661_v20 = vadd.f32 %v660_v19, %v658_v18 }
 0x407   :  { %v662_v22 = vadd.f32 %v661_v20, %v560_v21  ;;  %v675_v23 = vrot.slane %v661_v20, 4  ;;  %v689_v24 = vadd.f32 %v2338_v16, %v661_v20  ;;  %v2817_v20 = vld [vmem:[%s3130_s0] sm:$0xff] }
 0x409   :  { %vm663_vm11 = vcmp.ge.f32.partialorder %v662_v22, 0.0  ;;  %v664_v25 = vmul.f32 0.01, %v662_v22  ;;  %v677_v26 = vadd.f32 %v675_v23, %v560_v21  ;;  %vm690_vm12 = vcmp.ge.f32.partialorder %v689_v24, 0.0  ;;  %v2822_v23 = vld [vmem:[%s3130_s0 + $0x8] sm:$0xff] }
 0x40a   :  { %v691_v27 = vmul.f32 0.01, %v689_v24 }
 0x40b   :  { %v665_v28 = vsel %vm663_vm11, %v662_v22, %v664_v25  ;;  %vm678_vm13 = vcmp.ge.f32.partialorder %v677_v26, 0.0  ;;  %v679_v29 = vmul.f32 0.01, %v677_v26  ;;  %vm1061_vm11 = vcmask 41984  }
 0x40c   :  { %v667_v30 = vsel %vm666_vm10, %v665_v28, -inf  ;;  %v692_v31 = vsel %vm690_vm12, %v689_v24, %v691_v27  ;;  %v2827_v24 = vld [vmem:[%s3130_s0 + $0x10] sm:$0xff]  ;;  %vm1066_vm12 = vcmask 48130  }
 0x40d   :  { %v668_v32 = vrot.slane %v667_v30, 4  ;;  %v680_v33 = vsel %vm678_vm13, %v677_v26, %v679_v29  ;;  %v693_v34 = vsel %vm666_vm10, %v692_v31, -inf  ;;  %vm1059_vm10 = vcmask 48132  }
 0x40e   :  { %v682_v35 = vsel %vm681_vm14, %v680_v33, -inf  ;;  %v694_v36 = vrot.slane %v693_v34, 4  ;;  %vm1104_vm13 = vcmask 326656   ;;  %vm1378_vm14 = vcmask 293888  }
 0x40f   :  { %v669_v37 = vmax.f32 %v667_v30, %v668_v32  ;;  %v683_v38 = vrot.slane %v682_v35, 4 }
 0x410   :  { %v695_v39 = vmax.f32 %v693_v34, %v694_v36 }
 0x411   :  { %v670_v40 = vrot.slane %v669_v37, 2  ;;  %v684_v41 = vmax.f32 %v682_v35, %v683_v38 }
 0x412   :  { %v696_v42 = vrot.slane %v695_v39, 2 }
 0x413   :  { %v671_v43 = vmax.f32 %v669_v37, %v670_v40  ;;  %v685_v44 = vrot.slane %v684_v41, 2 }
 0x414   :  { %v697_v45 = vmax.f32 %v695_v39, %v696_v42  ;;  %v1073_v39 = vld [vmem:[%s3108_s10] sm:$0xff]  ;;  %v1075_v42 = vld [vmem:[%s3108_s10 + $0x10] sm:$0xff] }
 0x415   :  { %v672_v46 = vrot.slane %v671_v43, 1  ;;  %v686_v47 = vmax.f32 %v684_v41, %v685_v44  ;;  %v1074_v41 = vld [vmem:[%s3108_s10 + $0x8] sm:$0xff]  ;;  %v1076_v44 = vld [vmem:[%s3108_s10 + $0x18] sm:$0xff] }
 0x416   :  { %v698_v48 = vrot.slane %v697_v45, 1 }
 0x417   :  { %v687_v49 = vrot.slane %v686_v47, 1  ;;  %v673_v50 = vmax.f32 %v671_v43, %v672_v46  ;;  %v1319_v43 = vld [vmem:[%s3109_s11 + $0x20] sm:$0xf] }
 0x418   :  { %v699_v52 = vmax.f32 %v697_v45, %v698_v48  ;;  %v1318_v45 = vld [vmem:[%s3109_s11 + $0x18] sm:$0xff]  ;;  %v1077_v46 = vld [vmem:[%s3108_s10 + $0x20] sm:$0xf]  ;;  %v1316_v48 = vld [vmem:[%s3109_s11 + $0x8] sm:$0xff] }
 0x419   :  { %v688_v51 = vmax.f32 %v686_v47, %v687_v49  ;;  %v1317_v47 = vld [vmem:[%s3109_s11 + $0x10] sm:$0xff] }
 0x41b   :  { %v701_v53 = vsel %vm700_vm15, %v673_v50, %v688_v51  ;;  %vm1391_vm15 = vcmask 1043456  }
 0x41c   :  { %v703_v54 = vsel %vm702_vm1, %v701_v53, %v699_v52  ;;  %v2136_v53 = vld [vmem:[%s3108_s10 + $0x28] sm:$0xff]  ;;  %vm1631_vm1 = vcmask 261120  }
 0x41d   :  { %v705_v55 = vsel %vm704_vm2, %v703_v54, -inf }
 0x41e   :  { %v706_v56 = vrot.slane %v705_v55, 4 }
 0x420   :  { %v707_v57 = vmax.f32 %v705_v55, %v706_v56  ;;  %v2137_v55 = vld [vmem:[%s3108_s10 + $0x30] sm:$0xff]  ;;  %v2138_v56 = vld [vmem:[%s3108_s10 + $0x38] sm:$0xff] }
 0x422   :  { %v708_v58 = vrot.slane %v707_v57, 2 }
 0x424   :  { %v709_v59 = vmax.f32 %v707_v57, %v708_v58  ;;  %v2139_v57 = vld [vmem:[%s3108_s10 + $0x40] sm:$0xff]  ;;  %v2140_v58 = vld [vmem:[%s3108_s10 + $0x48] sm:$0xf] }
 0x426   :  { %v710_v60 = vrot.slane %v709_v59, 1 }
 0x428   :  { %v711_v61 = vmax.f32 %v709_v59, %v710_v60 }
 0x42a   :  { %v712_v62 = vsub.f32 %v703_v54, %v711_v61 }
 0x42c   :  { %v713_v63 = vmul.f32 1.442695, %v712_v62 }
 0x42e   :  { %2531 = vpow2.f32 %v713_v63 }
 0x43b   :  { %v2532_v0 = vpop.eup %2531 }
 0x43c   :  { %v715_v1 = vsel %vm704_vm2, %v2532_v0, 0.0 }
 0x43d   :  { %v716_v3 = vrot.slane %v715_v1, 4 }
 0x43f   :  { %v717_v6 = vadd.f32 %v716_v3, %v715_v1 }
 0x441   :  { %v718_v7 = vrot.slane %v717_v6, 2 }
 0x443   :  { %v719_v8 = vadd.f32 %v718_v7, %v717_v6 }
 0x445   :  { %v720_v10 = vrot.slane %v719_v8, 1 }
 0x447   :  { %v721_v11 = vadd.f32 %v720_v10, %v719_v8 }
 0x449   :  { %2533 = vrcp.f32 %v721_v11  ;;  %v1323_v11 = vpop.permute.xlu1 %1322 }
 0x456   :  { %v2534_v12 = vpop.eup %2533 }
 0x457   :  { %v723_v13 = vmul.f32 %v2534_v12, %v2532_v0 }
 0x459   :  { %2355 = vmatpush3.xpose.msk.msra.mxu1 %vm726_vm6, %v723_v13 }
 0x45a   :  { %2359 = vmatprep.subr.mxu1 %v2557_v2 }
 0x45c   :  { %2357 = vmatmul.mubr.msk.f32.vlgmr.msra.gmra.mxu1 %vm726_vm6, %v725_v14 }
 0x45d   :  { %2360 = vmatpush3.xpose.msk.msra.mxu1 %vm726_vm6, %v723_v13  ;;  %2361 = vmatprep.mubr.msk.f32.mxu1 %vm2558_vm0, %v2557_v2 }
 0x45e   :  { %2364 = vmatprep.subr.mxu1 %v2557_v2 }
 0x460   :  { %2362 = vmatmul.mubr.msk.f32.vlgmr.msra.gmra.mxu1 %vm726_vm6, %v2774_v9 }
 0x461   :  { %2365 = vmatpush3.xpose.msk.msra.mxu1 %vm889_vm5, %v888_v15  ;;  %2366 = vmatprep.mubr.msk.f32.mxu1 %vm2558_vm0, %v2557_v2 }
 0x462   :  { %2374 = vmatprep.subr.mxu1 %v2557_v2 }
 0x464   :  { %2367 = vmatmul.mubr.msk.f32.vlgmr.msra.gmra.mxu1 %vm889_vm5, %v888_v15 }
 0x465   :  { %2384 = vmatprep.mubr.msk.f32.mxu1 %vm2558_vm0, %v2557_v2 }
 0x51c   :  { %v799_v4 = vpop.f32.mrf.mxu1 }
 0x51d   :  { %803 = vst.msk [vmem:[#allocation4] sm:$0x7] %vm704_vm2, %v799_v4  ;;  %vm1876_vm2 = vcmask 228352  }
 0x51e   :  { %v2358_v5 = vpop.f32.mrf.mxu1 }
 0x51f   :  { %v1580_v5 = vld [vmem:[%s3111_s13 + $0x10] sm:$0xff] }
 0x520   :  { %v881_v16 = vpop.f32.mrf.mxu1 }
 0x521   :  { %2372 = vmatmul.mubr.msk.f32.vlgmr.msra.gmra.mxu0 %vm726_vm6, %v881_v16  ;;  %vm1044_vm6 = vcmask 46080  }
 0x522   :  { %v2363_v17 = vpop.f32.mrf.mxu1  ;;  %2409 = vmatprep.mubr.msk.f32.mxu0 %vm2558_vm0, %v2557_v2 }
 0x524   :  { %v959_v9 = vpop.f32.mrf.mxu1 }
 0x525   :  { %v963_v19 = vsub.f32 1.0, %v959_v9  ;;  %v1578_v9 = vld [vmem:[%s3111_s13] sm:$0xff] }
 0x526   :  { %v2368_v18 = vpop.f32.mrf.mxu1 }
 0x5e1   :  { %v1033_v21 = vpop.f32.mrf.mxu0 }
 0x5e2   :  { %v1034_v22 = vadd.f32 %v1033_v21, %v963_v19 }
 0x5e3   :  { %v2373_v25 = vpop.f32.mrf.mxu0 }
 0x5e4   :  { %v1043_v26 = vmul.f32 %v1034_v22, %v2817_v20  ;;  %v1047_v27 = vrot.slane %v1034_v22, 2  ;;  %v1055_v28 = vrot.slane %v1034_v22, 4  ;;  %v1063_v29 = vrot.slane %v1034_v22, 6 }
 0x5e6   :  { %1045 = vst.msk [vmem:[#allocation2] sm:$0x3f] %vm1044_vm6, %v1043_v26  ;;  %v1049_v30 = vmul.f32 %v1047_v27, %v2817_v20  ;;  %v1050_v31 = vmul.f32 %v1047_v27, %v2822_v23  ;;  %v1057_v32 = vmul.f32 %v1055_v28, %v2822_v23  ;;  %v1058_v33 = vmul.f32 %v1055_v28, %v2827_v24  ;;  %v1350_v28 = vld [vmem:[%s3110_s12] sm:$0xff] }
 0x5e7   :  { %v1065_v34 = vmul.f32 %v1063_v29, %v2827_v24 }
 0x5e8   :  { %1052 = vst.msk [vmem:[#allocation2 + $0x4] sm:$0xc0] %vm1051_vm8, %v1049_v30 }
 0x5e9   :  { %1054 = vst.msk [vmem:[#allocation2 + $0xc] sm:$0xf] %vm1053_vm9, %v1050_v31 }
 0x5ea   :  { %1060 = vst.msk [vmem:[#allocation2 + $0x10] sm:$0xf0] %vm1059_vm10, %v1057_v32 }
 0x5eb   :  { %1062 = vst.msk [vmem:[#allocation2 + $0x18] sm:$0x3] %vm1061_vm11, %v1058_v33  ;;  %v2151_v33 = vld [vmem:[%s3110_s12 + $0x20] sm:$0xff] }
 0x5ec   :  { %1067 = vst.msk [vmem:[#allocation2 + $0x1c] sm:$0xfc] %vm1066_vm12, %v1065_v34 }
 0x5ed   :  { %v1068_v40 = vld [vmem:[#allocation2] sm:$0xff] }
 0x5f0   :  { %v1069_v38 = vld [vmem:[#allocation2 + $0x8] sm:$0xff] }
 0x5f1   :  { %v1070_v37 = vld [vmem:[#allocation2 + $0x10] sm:$0xff] }
 0x5f3   :  { %v1072_v35 = vld [vmem:[#allocation2 + $0x20] sm:$0xff]  ;;  %v1071_v36 = vld [vmem:[#allocation2 + $0x18] sm:$0xff] }
 0x5f4   :  { %1097 = vrot.lane.b32.xlu0 %v1072_v35, %s2560_s23  ;;  %2400 = vmatpush3.msra.mxu0 %v1072_v35 }
 0x5f5   :  { %2401 = vmatprep.subr.mxu0 %v2557_v2 }
 0x5f6   :  { %2402 = vmatpush3.msra.mxu0 %v1071_v36 }
 0x5f7   :  { %2403 = vmatprep.subr.mxu0 %v2557_v2 }
 0x5f8   :  { %1095 = vrot.lane.b32.xlu0 %v1071_v36, %s2560_s23  ;;  %2404 = vmatpush3.msra.mxu0 %v1070_v37 }
 0x5f9   :  { %2405 = vmatprep.subr.mxu0 %v2557_v2 }
 0x5fa   :  { %2406 = vmatpush3.msra.mxu0 %v1069_v38 }
 0x5fb   :  { %2407 = vmatprep.subr.mxu0 %v2557_v2 }
 0x5fc   :  { %1093 = vrot.lane.b32.xlu0 %v1070_v37, %s2560_s23  ;;  %2408 = vmatpush3.msra.mxu0 %v1068_v40 }
 0x5fd   :  { %2410 = vmatmul.mubr.msk.f32.vlgmr.msra.gmra.mxu0 %vm1104_vm13, %v1073_v39  ;;  %v1352_v39 = vld [vmem:[%s3110_s12 + $0x10] sm:$0xff] }
 0x5fe   :  { %2412 = vmatprep.mubr.msk.f32.mxu0 %vm2558_vm0, %v2557_v2 }
 0x600   :  { %1091 = vrot.lane.b32.xlu0 %v1069_v38, %s2560_s23  ;;  %v1351_v38 = vld [vmem:[%s3110_s12 + $0x8] sm:$0xff] }
 0x601   :  { %2413 = vmatmul.mubr.msk.f32.gmra.mxu0 %vm1104_vm13, %v1074_v41  ;;  %v1353_v41 = vld [vmem:[%s3110_s12 + $0x18] sm:$0xff] }
 0x602   :  { %2415 = vmatprep.mubr.msk.f32.mxu0 %vm2558_vm0, %v2557_v2 }
 0x604   :  { %1089 = vrot.lane.b32.xlu0 %v1068_v40, %s2560_s23  ;;  %v1581_v40 = vld [vmem:[%s3111_s13 + $0x18] sm:$0xff] }
 0x605   :  { %2416 = vmatmul.mubr.msk.f32.gmra.mxu0 %vm1104_vm13, %v1075_v42  ;;  %v1579_v42 = vld [vmem:[%s3111_s13 + $0x8] sm:$0xff] }
 0x606   :  { %2418 = vmatprep.mubr.msk.f32.mxu0 %vm2558_vm0, %v2557_v2 }
 0x608   :  { %1342 = vperm.xlu0 %2529, %v1319_v43  }
 0x609   :  { %2419 = vmatmul.mubr.msk.f32.gmra.mxu0 %vm1104_vm13, %v1076_v44 }
 0x60a   :  { %2421 = vmatprep.mubr.msk.f32.mxu0 %vm2558_vm0, %v2557_v2 }
 0x60c   :  { %1337 = vperm.xlu0 %2529, %v1318_v45  }
 0x60d   :  { %2422 = vmatmul.mubr.msk.f32.gmra.mxu0 %vm1104_vm13, %v1077_v46 }
 0x60e   :  { %2450 = vmatprep.mubr.msk.f32.mxu0 %vm1378_vm14, %v1350_v28 }
 0x610   :  { %1332 = vperm.xlu0 %2529, %v1317_v47  }
 0x614   :  { %1327 = vperm.xlu0 %2529, %v1316_v48   ;;  %v2152_v48 = vld [vmem:[%s3110_s12 + $0x28] sm:$0xff] }
 0x666   :  { %v1098_v49 = vpop.permute.xlu0 %1097 }
 0x667   :  { %2375 = vmatpush3.msra.mxu1 %v1098_v49  ;;  %v2153_v49 = vld [vmem:[%s3110_s12 + $0x30] sm:$0xff] }
 0x668   :  { %2376 = vmatprep.subr.mxu1 %v2557_v2 }
 0x66a   :  { %v1096_v50 = vpop.permute.xlu0 %1095 }
 0x66b   :  { %2377 = vmatpush3.msra.mxu1 %v1096_v50  ;;  %v2154_v50 = vld [vmem:[%s3110_s12 + $0x38] sm:$0xff] }
 0x66c   :  { %2378 = vmatprep.subr.mxu1 %v2557_v2 }
 0x66e   :  { %v1094_v51 = vpop.permute.xlu0 %1093 }
 0x66f   :  { %2379 = vmatpush3.msra.mxu1 %v1094_v51 }
 0x670   :  { %2380 = vmatprep.subr.mxu1 %v2557_v2 }
 0x672   :  { %v1092_v52 = vpop.permute.xlu0 %1091 }
 0x673   :  { %2381 = vmatpush3.msra.mxu1 %v1092_v52 }
 0x674   :  { %2382 = vmatprep.subr.mxu1 %v2557_v2 }
 0x676   :  { %v1090_v54 = vpop.permute.xlu0 %1089 }
 0x677   :  { %2383 = vmatpush3.msra.mxu1 %v1090_v54  ;;  %v1606_v54 = vld [vmem:[%s3112_s14] sm:$0xff] }
 0x678   :  { %2385 = vmatmul.mubr.msk.f32.vlgmr.msra.gmra.mxu1 %vm1104_vm13, %v2136_v53 }
 0x679   :  { %2387 = vmatprep.mubr.msk.f32.mxu1 %vm2558_vm0, %v2557_v2 }
 0x67c   :  { %2388 = vmatmul.mubr.msk.f32.gmra.mxu1 %vm1104_vm13, %v2137_v55 }
 0x67d   :  { %2390 = vmatprep.mubr.msk.f32.mxu1 %vm2558_vm0, %v2557_v2 }
 0x680   :  { %2391 = vmatmul.mubr.msk.f32.gmra.mxu1 %vm1104_vm13, %v2138_v56 }
 0x681   :  { %2393 = vmatprep.mubr.msk.f32.mxu1 %vm2558_vm0, %v2557_v2 }
 0x683   :  { %v1343_v15 = vpop.permute.xlu0 %1342 }
 0x684   :  { %2394 = vmatmul.mubr.msk.f32.gmra.mxu1 %vm1104_vm13, %v2139_v57  ;;  %v2165_v57 = vld [vmem:[%s3112_s14 + $0x20] sm:$0xff] }
 0x685   :  { %2396 = vmatprep.mubr.msk.f32.mxu1 %vm2558_vm0, %v2557_v2 }
 0x687   :  { %v1338_v18 = vpop.permute.xlu0 %1337 }
 0x688   :  { %2397 = vmatmul.mubr.msk.f32.gmra.mxu1 %vm1104_vm13, %v2140_v58 }
 0x689   :  { %2434 = vmatprep.mubr.msk.f32.mxu1 %vm1378_vm14, %v2151_v33 }
 0x68b   :  { %v1333_v29 = vpop.permute.xlu0 %1332 }
 0x68f   :  { %v1328_v36 = vpop.permute.xlu0 %1327 }
 0x6bd   :  { %v1291_v59 = vpop.f32.mrf.mxu0 }
 0x6bf   :  { %v2411_v60 = vpop.f32.mrf.mxu0 }
 0x6c1   :  { %v1296_v61 = vpop.f32.mrf.mxu0 }
 0x6c3   :  { %v2414_v62 = vpop.f32.mrf.mxu0 }
 0x6c5   :  { %v1301_v63 = vpop.f32.mrf.mxu0 }
 0x6c7   :  { %v2417_v0 = vpop.f32.mrf.mxu0 }
 0x6c9   :  { %v1306_v1 = vpop.f32.mrf.mxu0 }
 0x6cb   :  { %v2420_v3 = vpop.f32.mrf.mxu0 }
 0x6cd   :  { %v1311_v6 = vpop.f32.mrf.mxu0 }
 0x6cf   :  { %v2423_v7 = vpop.f32.mrf.mxu0 }
 0x738   :  { %v1186_v8 = vpop.f32.mrf.mxu1 }
 0x739   :  { %v1292_v10 = vadd.f32 %v1291_v59, %v1186_v8 }
 0x73a   :  { %v2386_v12 = vpop.f32.mrf.mxu1 }
 0x73b   :  { %v1345_v13 = vadd.f32 %v1323_v11, %v1292_v10 }
 0x73c   :  { %v1191_v14 = vpop.f32.mrf.mxu1 }
 0x73d   :  { %1364 = vrot.lane.b32.xlu1 %v1345_v13, %s2560_s23  ;;  %v1297_v34 = vadd.f32 %v1296_v61, %v1191_v14  ;;  %v1607_v14 = vld [vmem:[%s3112_s14 + $0x8] sm:$0xff] }
 0x73e   :  { %v2389_v4 = vpop.f32.mrf.mxu1 }
 0x73f   :  { %v1346_v37 = vadd.f32 %v1328_v36, %v1297_v34  ;;  %v1828_v4 = vld [vmem:[%s3113_s15 + $0x10] sm:$0xff] }
 0x740   :  { %v1196_v16 = vpop.f32.mrf.mxu1 }
 0x741   :  { %1594 = vperm.xlu1 %2530, %v1580_v5   ;;  %v1302_v31 = vadd.f32 %v1301_v63, %v1196_v16  ;;  %v1827_v5 = vld [vmem:[%s3113_s15 + $0x8] sm:$0xff]  ;;  %v1609_v16 = vld [vmem:[%s3112_s14 + $0x18] sm:$0xf] }
 0x742   :  { %v2392_v17 = vpop.f32.mrf.mxu1 }
 0x743   :  { %v1347_v35 = vadd.f32 %v1333_v29, %v1302_v31  ;;  %v1826_v17 = vld [vmem:[%s3113_s15] sm:$0xff] }
 0x744   :  { %v1201_v19 = vpop.f32.mrf.mxu1 }
 0x745   :  { %v1307_v21 = vadd.f32 %v1306_v1, %v1201_v19  ;;  %1584 = vperm.xlu1 %2530, %v1578_v9  }
 0x746   :  { %v2395_v22 = vpop.f32.mrf.mxu1 }
 0x747   :  { %v1348_v25 = vadd.f32 %v1338_v18, %v1307_v21  ;;  %v2166_v22 = vld [vmem:[%s3112_s14 + $0x28] sm:$0xff] }
 0x748   :  { %v1206_v26 = vpop.f32.mrf.mxu1 }
 0x749   :  { %v1312_v27 = vadd.f32 %v1311_v6, %v1206_v26  ;;  %1370 = vrot.lane.b32.xlu0 %v1348_v25, %s2560_s23  ;;  %v2168_v26 = vld [vmem:[%s3112_s14 + $0x38] sm:$0xf] }
 0x74a   :  { %v2398_v30 = vpop.f32.mrf.mxu1 }
 0x74b   :  { %v1349_v32 = vadd.f32 %v1343_v15, %v1312_v27  ;;  %v1608_v15 = vld [vmem:[%s3112_s14 + $0x10] sm:$0xff] }
 0x74d   :  { %1372 = vrot.lane.b32.xlu0 %v1349_v32, %s2560_s23  ;;  %2440 = vmatprep.subr.msk.mxu0 %vm1391_vm15, %v1349_v32 }
 0x74e   :  { %2441 = vmatpush3.msk.msra.mxu0 %vm1391_vm15, %v1349_v32 }
 0x74f   :  { %2442 = vmatprep.subr.mxu0 %v1348_v25 }
 0x750   :  { %2443 = vmatpush3.msra.mxu0 %v1348_v25  ;;  %v2167_v25 = vld [vmem:[%s3112_s14 + $0x30] sm:$0xff] }
 0x751   :  { %1368 = vrot.lane.b32.xlu0 %v1347_v35, %s2560_s23  ;;  %2444 = vmatprep.subr.mxu0 %v1347_v35 }
 0x752   :  { %2445 = vmatpush3.msra.mxu0 %v1347_v35 }
 0x753   :  { %2446 = vmatprep.subr.mxu0 %v1346_v37 }
 0x754   :  { %2447 = vmatpush3.msra.mxu0 %v1346_v37 }
 0x755   :  { %1366 = vrot.lane.b32.xlu0 %v1346_v37, %s2560_s23  ;;  %2448 = vmatprep.subr.mxu0 %v1345_v13 }
 0x756   :  { %2449 = vmatpush3.msra.mxu0 %v1345_v13  ;;  %v1829_v13 = vld [vmem:[%s3113_s15 + $0x18] sm:$0xf] }
 0x757   :  { %2451 = vmatmul.mubr.msk.f32.vlgmr.msra.gmra.mxu0 %vm1378_vm14, %v1351_v38 }
 0x758   :  { %2453 = vmatprep.mubr.msk.f32.mxu0 %vm1378_vm14, %v1352_v39 }
 0x759   :  { %1599 = vperm.xlu0 %2529, %v1581_v40  }
 0x75b   :  { %2454 = vmatmul.mubr.msk.f32.gmra.mxu0 %vm1378_vm14, %v1353_v41 }
 0x75c   :  { %2478 = vmatprep.mubr.msk.f32.mxu0 %vm1631_vm1, %v1606_v54 }
 0x75d   :  { %1589 = vperm.xlu0 %2529, %v1579_v42  }
 0x7af   :  { %v1365_v47 = vpop.permute.xlu1 %1364 }
 0x7bb   :  { %v1371_v43 = vpop.permute.xlu0 %1370 }
 0x7bc   :  { %v1595_v60 = vpop.permute.xlu1 %1594 }
 0x7bf   :  { %v1373_v44 = vpop.permute.xlu0 %1372 }
 0x7c0   :  { %2424 = vmatprep.subr.msk.mxu1 %vm1391_vm15, %v1373_v44  ;;  %v1585_v11 = vpop.permute.xlu1 %1584 }
 0x7c1   :  { %2425 = vmatpush3.msk.msra.mxu1 %vm1391_vm15, %v1373_v44 }
 0x7c2   :  { %2426 = vmatprep.subr.mxu1 %v1371_v43 }
 0x7c3   :  { %2427 = vmatpush3.msra.mxu1 %v1371_v43  ;;  %v1369_v45 = vpop.permute.xlu0 %1368 }
 0x7c4   :  { %2428 = vmatprep.subr.mxu1 %v1369_v45 }
 0x7c5   :  { %2429 = vmatpush3.msra.mxu1 %v1369_v45 }
 0x7c7   :  { %v1367_v46 = vpop.permute.xlu0 %1366 }
 0x7c8   :  { %2430 = vmatprep.subr.mxu1 %v1367_v46 }
 0x7c9   :  { %2431 = vmatpush3.msra.mxu1 %v1367_v46 }
 0x7ca   :  { %2432 = vmatprep.subr.mxu1 %v1365_v47 }
 0x7cb   :  { %2433 = vmatpush3.msra.mxu1 %v1365_v47  ;;  %v1854_v47 = vld [vmem:[%s3114_s16] sm:$0xff] }
 0x7cc   :  { %2435 = vmatmul.mubr.msk.f32.vlgmr.msra.gmra.mxu1 %vm1378_vm14, %v2152_v48  ;;  %v2059_v48 = vld [vmem:[%s3115_s17] sm:$0xff] }
 0x7cd   :  { %2437 = vmatprep.mubr.msk.f32.mxu1 %vm1378_vm14, %v2153_v49  ;;  %v2060_v49 = vld [vmem:[%s3115_s17 + $0x8] sm:$0xff] }
 0x7d0   :  { %2438 = vmatmul.mubr.msk.f32.gmra.mxu1 %vm1378_vm14, %v2154_v50  ;;  %v1855_v50 = vld [vmem:[%s3114_s16 + $0x8] sm:$0xff] }
 0x7d1   :  { %2464 = vmatprep.mubr.msk.f32.mxu1 %vm1631_vm1, %v2165_v57 }
 0x7d4   :  { %v1600_v58 = vpop.permute.xlu0 %1599 }
 0x7d8   :  { %v1590_v8 = vpop.permute.xlu0 %1589 }
 0x817   :  { %v2452_v51 = vpop.f32.mrf.mxu0 }
 0x819   :  { %v1559_v52 = vpop.f32.mrf.mxu0 }
 0x81b   :  { %v2455_v56 = vpop.f32.mrf.mxu0 }
 0x81d   :  { %v1569_v63 = vpop.f32.mrf.mxu0 }
 0x88c   :  { %v2436_v53 = vpop.f32.mrf.mxu1 }
 0x88d   :  { %v1565_v0 = vadd.f32 %v2452_v51, %v2436_v53  ;;  %v2061_v51 = vld [vmem:[%s3115_s17 + $0x10] sm:$0xff] }
 0x88e   :  { %v1460_v55 = vpop.f32.mrf.mxu1 }
 0x88f   :  { %v1560_v6 = vadd.f32 %v1559_v52, %v1460_v55  ;;  %v1603_v10 = vadd.f32 %v1590_v8, %v1565_v0  ;;  %v1856_v52 = vld [vmem:[%s3114_s16 + $0x10] sm:$0xff] }
 0x890   :  { %v2439_v59 = vpop.f32.mrf.mxu1 }
 0x891   :  { %v1575_v61 = vadd.f32 %v2455_v56, %v2439_v59  ;;  %v1602_v12 = vadd.f32 %v1585_v11, %v1560_v6  ;;  %v2177_v56 = vld [vmem:[%s3114_s16 + $0x18] sm:$0xff]  ;;  %v2179_v59 = vld [vmem:[%s3114_s16 + $0x28] sm:$0xff] }
 0x892   :  { %v1470_v62 = vpop.f32.mrf.mxu1 }
 0x893   :  { %v1605_v1 = vadd.f32 %v1600_v58, %v1575_v61  ;;  %v1570_v3 = vadd.f32 %v1569_v63, %v1470_v62  ;;  %v2178_v58 = vld [vmem:[%s3114_s16 + $0x20] sm:$0xff] }
 0x895   :  { %v1604_v7 = vadd.f32 %v1595_v60, %v1570_v3  ;;  %1625 = vrot.lane.b32.xlu0 %v1605_v1, %s2560_s23  ;;  %2470 = vmatprep.subr.mxu0 %v1605_v1 }
 0x896   :  { %2471 = vmatpush3.msra.mxu0 %v1605_v1 }
 0x897   :  { %1623 = vrot.lane.b32.xlu1 %v1604_v7, %s2560_s23  ;;  %2472 = vmatprep.subr.mxu0 %v1604_v7 }
 0x898   :  { %2473 = vmatpush3.msra.mxu0 %v1604_v7 }
 0x899   :  { %1621 = vrot.lane.b32.xlu0 %v1603_v10, %s2560_s23  ;;  %2474 = vmatprep.subr.mxu0 %v1603_v10 }
 0x89a   :  { %2475 = vmatpush3.msra.mxu0 %v1603_v10 }
 0x89b   :  { %1619 = vrot.lane.b32.xlu1 %v1602_v12, %s2560_s23  ;;  %2476 = vmatprep.subr.mxu0 %v1602_v12 }
 0x89c   :  { %2477 = vmatpush3.msra.mxu0 %v1602_v12 }
 0x89d   :  { %1847 = vperm.xlu0 %2529, %v1829_v13   ;;  %2479 = vmatmul.mubr.msk.f32.vlgmr.msra.gmra.mxu0 %vm1631_vm1, %v1607_v14 }
 0x89e   :  { %2481 = vmatprep.mubr.msk.f32.mxu0 %vm1631_vm1, %v1608_v15  ;;  %2501 = vmatprep.subr.mxu0 %v2557_v2 }
 0x89f   :  { %1842 = vperm.xlu1 %2530, %v1828_v4  }
 0x8a1   :  { %1837 = vperm.xlu0 %2529, %v1827_v5   ;;  %2482 = vmatmul.mubr.msk.f32.gmra.mxu0 %vm1631_vm1, %v1609_v16 }
 0x8a2   :  { %2509 = vmatprep.mubr.msk.f32.mxu0 %vm2558_vm0, %v2557_v2 }
 0x8a3   :  { %1832 = vperm.xlu1 %2530, %v1826_v17  }
 0x907   :  { %v1626_v9 = vpop.permute.xlu0 %1625 }
 0x908   :  { %2456 = vmatprep.subr.mxu1 %v1626_v9 }
 0x909   :  { %2457 = vmatpush3.msra.mxu1 %v1626_v9  ;;  %v1624_v18 = vpop.permute.xlu1 %1623 }
 0x90a   :  { %2458 = vmatprep.subr.mxu1 %v1624_v18 }
 0x90b   :  { %v1622_v19 = vpop.permute.xlu0 %1621  ;;  %2459 = vmatpush3.msra.mxu1 %v1624_v18 }
 0x90c   :  { %2460 = vmatprep.subr.mxu1 %v1622_v19 }
 0x90d   :  { %2461 = vmatpush3.msra.mxu1 %v1622_v19  ;;  %v1620_v21 = vpop.permute.xlu1 %1619 }
 0x90e   :  { %2462 = vmatprep.subr.mxu1 %v1620_v21 }
 0x90f   :  { %2463 = vmatpush3.msra.mxu1 %v1620_v21 }
 0x910   :  { %2465 = vmatmul.mubr.msk.f32.vlgmr.msra.gmra.mxu1 %vm1631_vm1, %v2166_v22  ;;  %2484 = vmatprep.subr.mxu1 %v2557_v2 }
 0x911   :  { %2467 = vmatprep.mubr.msk.f32.mxu1 %vm1631_vm1, %v2167_v25 }
 0x914   :  { %2468 = vmatmul.mubr.msk.f32.gmra.mxu1 %vm1631_vm1, %v2168_v26 }
 0x915   :  { %2492 = vmatprep.mubr.msk.f32.mxu1 %vm2558_vm0, %v2557_v2 }
 0x918   :  { %v1848_v32 = vpop.permute.xlu0 %1847 }
 0x91a   :  { %v1843_v34 = vpop.permute.xlu1 %1842 }
 0x91c   :  { %v1838_v43 = vpop.permute.xlu0 %1837 }
 0x91e   :  { %v1833_v45 = vpop.permute.xlu1 %1832 }
 0x95d   :  { %v2480_v27 = vpop.f32.mrf.mxu0 }
 0x95f   :  { %v1807_v28 = vpop.f32.mrf.mxu0 }
 0x961   :  { %v2483_v31 = vpop.f32.mrf.mxu0 }
 0x963   :  { %v1817_v37 = vpop.f32.mrf.mxu0 }
 0x9d0   :  { %v2466_v29 = vpop.f32.mrf.mxu1 }
 0x9d1   :  { %v1813_v38 = vadd.f32 %v2480_v27, %v2466_v29 }
 0x9d2   :  { %v1710_v30 = vpop.f32.mrf.mxu1 }
 0x9d3   :  { %v1808_v41 = vadd.f32 %v1807_v28, %v1710_v30  ;;  %v1851_v44 = vadd.f32 %v1838_v43, %v1813_v38 }
 0x9d4   :  { %v2469_v33 = vpop.f32.mrf.mxu1 }
 0x9d5   :  { %v1823_v35 = vadd.f32 %v2483_v31, %v2469_v33  ;;  %v1850_v46 = vadd.f32 %v1833_v45, %v1808_v41 }
 0x9d6   :  { %v1720_v36 = vpop.f32.mrf.mxu1 }
 0x9d7   :  { %v1853_v39 = vadd.f32 %v1848_v32, %v1823_v35  ;;  %v1818_v40 = vadd.f32 %v1817_v37, %v1720_v36 }
 0x9d9   :  { %v1852_v42 = vadd.f32 %v1843_v34, %v1818_v40  ;;  %1871 = vrot.lane.b32.xlu0 %v1853_v39, %s2560_s23  ;;  %2502 = vmatpush3.msk.msra.mxu0 %vm1391_vm15, %v1853_v39 }
 0x9da   :  { %2503 = vmatprep.subr.mxu0 %v2557_v2 }
 0x9db   :  { %1869 = vrot.lane.b32.xlu1 %v1852_v42, %s2560_s23  ;;  %2504 = vmatpush3.msra.mxu0 %v1852_v42 }
 0x9dc   :  { %2505 = vmatprep.subr.mxu0 %v2557_v2 }
 0x9dd   :  { %1867 = vrot.lane.b32.xlu0 %v1851_v44, %s2560_s23  ;;  %2506 = vmatpush3.msra.mxu0 %v1851_v44 }
 0x9de   :  { %2507 = vmatprep.subr.mxu0 %v2557_v2 }
 0x9df   :  { %1865 = vrot.lane.b32.xlu1 %v1850_v46, %s2560_s23  ;;  %2508 = vmatpush3.msra.mxu0 %v1850_v46 }
 0x9e0   :  { %2510 = vmatmul.mubr.msk.f32.vlgmr.msra.gmra.mxu0 %vm1876_vm2, %v1854_v47 }
 0x9e1   :  { %2064 = vperm.xlu0 %2529, %v2059_v48   ;;  %2512 = vmatprep.mubr.msk.f32.mxu0 %vm2558_vm0, %v2557_v2 }
 0x9e3   :  { %2069 = vperm.xlu1 %2530, %v2060_v49  }
 0x9e4   :  { %2513 = vmatmul.mubr.msk.f32.gmra.mxu0 %vm1876_vm2, %v1855_v50 }
 0x9e5   :  { %2074 = vperm.xlu0 %2529, %v2061_v51   ;;  %2515 = vmatprep.mubr.msk.f32.mxu0 %vm2558_vm0, %v2557_v2 }
 0x9e8   :  { %2516 = vmatmul.mubr.msk.f32.gmra.mxu0 %vm1876_vm2, %v1856_v52 }
 0xa4b   :  { %v1872_v53 = vpop.permute.xlu0 %1871 }
 0xa4c   :  { %2485 = vmatpush3.msk.msra.mxu1 %vm1391_vm15, %v1872_v53 }
 0xa4d   :  { %2486 = vmatprep.subr.mxu1 %v2557_v2  ;;  %v1870_v54 = vpop.permute.xlu1 %1869 }
 0xa4e   :  { %2487 = vmatpush3.msra.mxu1 %v1870_v54 }
 0xa4f   :  { %v1868_v55 = vpop.permute.xlu0 %1867  ;;  %2488 = vmatprep.subr.mxu1 %v2557_v2 }
 0xa50   :  { %2489 = vmatpush3.msra.mxu1 %v1868_v55 }
 0xa51   :  { %2490 = vmatprep.subr.mxu1 %v2557_v2  ;;  %v1866_v57 = vpop.permute.xlu1 %1865 }
 0xa52   :  { %2491 = vmatpush3.msra.mxu1 %v1866_v57 }
 0xa53   :  { %2493 = vmatmul.mubr.msk.f32.vlgmr.msra.gmra.mxu1 %vm1876_vm2, %v2177_v56 }
 0xa54   :  { %2495 = vmatprep.mubr.msk.f32.mxu1 %vm2558_vm0, %v2557_v2 }
 0xa57   :  { %2496 = vmatmul.mubr.msk.f32.gmra.mxu1 %vm1876_vm2, %v2178_v58 }
 0xa58   :  { %2498 = vmatprep.mubr.msk.f32.mxu1 %vm2558_vm0, %v2557_v2 }
 0xa5b   :  { %2499 = vmatmul.mubr.msk.f32.gmra.mxu1 %vm1876_vm2, %v2179_v59 }
 0xaa0   :  { %v2045_v60 = vpop.f32.mrf.mxu0 }
 0xaa2   :  { %v2511_v61 = vpop.f32.mrf.mxu0 }
 0xaa4   :  { %v2050_v62 = vpop.f32.mrf.mxu0 }
 0xaa6   :  { %v2514_v63 = vpop.f32.mrf.mxu0 }
 0xaa7   :  { %2546 = shalt.err (!%p2543_p4)
}
 0xaa8   :  { %2105 = dma.vmem_to_hbm [thread:$0]  %s2103_s26, 64, %s3118_s20, [#allocation5]   ;;  %v2055_v2 = vpop.f32.mrf.mxu0  ;;  %v2065_v6 = vpop.permute.xlu0 %2064  ;;  %v2081_v7 = vstv %s3116_s18 }
 0xaa9   :  { %v2070_v14 = vpop.permute.xlu1 %2069 }
 0xaaa   :  { %v2517_v0 = vpop.f32.mrf.mxu0 }
 0xaac   :  { %v2075_v19 = vpop.permute.xlu0 %2074 }
 0xb13   :  { %v1954_v1 = vpop.f32.mrf.mxu1 }
 0xb14   :  { %v2046_v3 = vadd.f32 %v2045_v60, %v1954_v1 }
 0xb15   :  { %v2494_v8 = vpop.f32.mrf.mxu1 }
 0xb16   :  { %v2077_v10 = vadd.f32 %v2065_v6, %v2046_v3 }
 0xb17   :  { %v1959_v11 = vpop.f32.mrf.mxu1 }
 0xb18   :  { %v2082_v12 = vmul.f32 %v2081_v7, %v2077_v10  ;;  %v2051_v13 = vadd.f32 %v2050_v62, %v1959_v11 }
 0xb19   :  { %v2497_v15 = vpop.f32.mrf.mxu1 }
 0xb1a   :  { %v2085_v4 = vadd.f32 %v2082_v12, %v2817_v20  ;;  %v2078_v5 = vadd.f32 %v2070_v14, %v2051_v13 }
 0xb1b   :  { %v1964_v16 = vpop.f32.mrf.mxu1 }
 0xb1c   :  { %v2088_v17 = vmax.f32 %v2085_v4, 0.0  ;;  %v2083_v9 = vmul.f32 %v2081_v7, %v2078_v5  ;;  %v2056_v18 = vadd.f32 %v2055_v2, %v1964_v16 }
 0xb1d   :  { %v2500_v21 = vpop.f32.mrf.mxu1 }
 0xb1e   :  { %2091 = vst.msk [vmem:[%s3117_s19] sm:$0xff] %vm85_vm3, %v2088_v17  ;;  %v2086_v22 = vadd.f32 %v2083_v9, %v2822_v23  ;;  %v2079_v25 = vadd.f32 %v2075_v19, %v2056_v18 }
 0xb20   :  { %v2089_v26 = vmax.f32 %v2086_v22, 0.0  ;;  %v2084_v27 = vmul.f32 %v2081_v7, %v2079_v25 }
 0xb22   :  { %2092 = vst.msk [vmem:[%s3117_s19 + $0x8] sm:$0xff] %vm85_vm3, %v2089_v26  ;;  %v2087_v20 = vadd.f32 %v2084_v27, %v2827_v24 }
 0xb24   :  { %v2090_v28 = vmax.f32 %v2087_v20, 0.0 }
 0xb26   :  { %2093 = vst.msk [vmem:[%s3117_s19 + $0x10] sm:$0xff] %vm85_vm3, %v2090_v28 }
 0xb27   :  { %2555 = dma.done.wait [#allocation5], 64  }
 0xb28   :  { %2556 = vsyncadd [#allocation5], 4294967232 }
 0xb29   :  { %2111 = vsyncpa [#allocation5], 1 }

</bundles_post_ra>
